<compile_context>
chip_gen: v7x
topology: tpu7x:2x2x1
jax: 0.10.0
libtpu: 0.0.40
codegen_flags: <defaults>
</compile_context>

<pallas_src>
import jax
import jax.numpy as jnp
from jax.experimental import pallas as pl
from jax.experimental.pallas import tpu as pltpu

# ---- static model config (small synthetic sizes) -----------------------------
HIST = 3            # history_steps
FORECAST = 2        # forecast_steps
NUM_LAYERS = 3      # SpectralGNN layers
K = 3               # Chebyshev order
IN_CH = 4           # raw node feature channels
HIDDEN = 32         # hidden_channels
OUT_CH = 3          # out_channels
N_PER_GRAPH = 8     # nodes per graph
NUM_GRAPHS = 2      # graphs in the batch
EPS_LN = 1e-5


# ==============================================================================
# Fused kernel: SpectralGNN over all timesteps (sublane-stacked) + global mean
# pool + single-layer LSTM + MLP head.  Single invocation, no grid.
# ==============================================================================
def weather_kernel(x_ref, lhat_ref, pool_ref, in_bias_ref, w_in_x_ref,
                   w_cheb_ref, hb_ref, w_out_ref,
                   w_ih_ref, w_hh_ref, b_lstm_ref,
                   w1_ref, w2_ref, w3_ref, mlp_b_ref,
                   out_ref):
    hid = HIDDEN
    bsz = out_ref.shape[0]

    lhat = lhat_ref[...]                # (T*N, T*N)  block-diagonal Laplacian

    # ---- input projection; time-encoding + bias is a precomputed constant ----
    h = (jnp.dot(x_ref[...], w_in_x_ref[...],
                 preferred_element_type=jnp.float32)
         + in_bias_ref[...])                                        # (T*N, H)

    # ---- SpectralGNN layers --------------------------------------------------
    # hb_ref rows: [0..L-1] b_cheb, [L..2L-1] gamma, [2L..3L-1] beta, [3L] b_out
    for l in range(NUM_LAYERS):
        identity = h
        # ChebConv: T0 = x, T1 = L x, Tk = 2 L T_{k-1} - T_{k-2}; per-k accum.
        t0 = h
        t1 = jnp.dot(lhat, t0, preferred_element_type=jnp.float32)
        out = (jnp.dot(t0, w_cheb_ref[l * K + 0],
                       preferred_element_type=jnp.float32)
               + jnp.dot(t1, w_cheb_ref[l * K + 1],
                         preferred_element_type=jnp.float32))
        t_prev, t_cur = t0, t1
        for k in range(2, K):
            t_next = (2.0 * jnp.dot(lhat, t_cur,
                                    preferred_element_type=jnp.float32)
                      - t_prev)
            out = out + jnp.dot(t_next, w_cheb_ref[l * K + k],
                                preferred_element_type=jnp.float32)
            t_prev, t_cur = t_cur, t_next
        out = out + hb_ref[l:l + 1, :]                              # b_cheb[l]

        # ReLU -> dropout(identity, eval) -> residual
        h = jnp.maximum(out, 0.0) + identity

        # LayerNorm (biased variance), gamma folded into the rsqrt scale
        mean = jnp.mean(h, axis=-1, keepdims=True)
        var = jnp.mean(h * h, axis=-1, keepdims=True) - mean * mean
        scale = jax.lax.rsqrt(var + EPS_LN) * hb_ref[NUM_LAYERS + l:
                                                     NUM_LAYERS + l + 1, :]
        h = (h - mean) * scale + hb_ref[2 * NUM_LAYERS + l:
                                        2 * NUM_LAYERS + l + 1, :]

    # output projection
    node_feat = (jnp.dot(h, w_out_ref[...],
                         preferred_element_type=jnp.float32)
                 + hb_ref[3 * NUM_LAYERS:3 * NUM_LAYERS + 1, :])    # (T*N, H)

    # global mean pool for all timesteps at once: (T*B, T*N) @ (T*N, H)
    pooled = jnp.dot(pool_ref[...], node_feat,
                     preferred_element_type=jnp.float32)            # (T*B, H)

    # ---- single-layer LSTM ----------------------------------------------------
    # Input-gate contributions for ALL timesteps in one matmul (gate order
    # i, f, g, o along lane blocks of width H).
    gates_x = (jnp.dot(pooled, w_ih_ref[...],
                       preferred_element_type=jnp.float32)
               + b_lstm_ref[...])                                   # (T*B, 4H)

    hs = jnp.zeros((bsz, hid), jnp.float32)
    cs = jnp.zeros((bsz, hid), jnp.float32)
    for t in range(HIST):                                           # static loop
        gates = (gates_x[t * bsz:(t + 1) * bsz, :]
                 + jnp.dot(hs, w_hh_ref[...],
                           preferred_element_type=jnp.float32))     # (B, 4H)
        i_g = jax.nn.sigmoid(gates[:, 0 * hid:1 * hid])
        f_g = jax.nn.sigmoid(gates[:, 1 * hid:2 * hid])
        g_g = jnp.tanh(gates[:, 2 * hid:3 * hid])
        o_g = jax.nn.sigmoid(gates[:, 3 * hid:4 * hid])
        cs = f_g * cs + i_g * g_g
        hs = o_g * jnp.tanh(cs)

    # ---- MLP head on last LSTM hidden state (dropout = identity in eval) -----
    b1 = mlp_b_ref[0:1, :]
    b2 = mlp_b_ref[1:2, 0:HIDDEN]
    b3 = mlp_b_ref[2:3, 0:OUT_CH * FORECAST]
    z = jnp.maximum(jnp.dot(hs, w1_ref[...],
                            preferred_element_type=jnp.float32) + b1, 0.0)
    z = jnp.maximum(jnp.dot(z, w2_ref[...],
                            preferred_element_type=jnp.float32) + b2, 0.0)
    out_ref[...] = jnp.dot(z, w3_ref[...],
                           preferred_element_type=jnp.float32) + b3


# ==============================================================================
# Wrapper (jitted; all graph-structure constants are built once, outside)
# ==============================================================================
@jax.jit
def weather_gnn_forward(x_hist, consts):
    T, N, Cin = x_hist.shape
    x_stacked = x_hist.reshape(T * N, Cin)                          # (T*N, Cin)

    vmem = pl.BlockSpec(memory_space=pltpu.MemorySpace.VMEM)
    pred_flat = pl.pallas_call(
        weather_kernel,
        out_shape=jax.ShapeDtypeStruct((NUM_GRAPHS, OUT_CH * FORECAST),
                                       jnp.float32),
        in_specs=[vmem] * 15,
        out_specs=vmem,
    )(x_stacked,
      consts["lhat_big"], consts["pool_big"], consts["in_bias"],
      consts["w_in_x"], consts["w_cheb"], consts["hb"], consts["w_out"],
      consts["w_ih"], consts["w_hh"], consts["b_lstm"],
      consts["w1"], consts["w2"], consts["w3"], consts["mlp_b"])

    # [B, forecast_steps, out_channels]
    return pred_flat.reshape(NUM_GRAPHS, FORECAST, OUT_CH)


# ==============================================================================
# Deterministic parameter / input / constant construction
# ==============================================================================
def make_params(key):
    ks = jax.random.split(key, 20)
    s = 0.1
    H = HIDDEN
    return {
        # time encoder Linear(1, H) ([in, out] layout)
        "w_time": s * jax.random.normal(ks[0], (1, H), jnp.float32),
        "b_time": s * jax.random.normal(ks[1], (1, H), jnp.float32),
        # SpectralGNN input_proj Linear(IN_CH + H, H), split into the raw-
        # feature block and the time-feature block (equivalent to one Linear
        # acting on the concatenated input).
        "w_in_x": s * jax.random.normal(ks[2], (IN_CH, H), jnp.float32),
        "w_in_t": s * jax.random.normal(ks[17], (H, H), jnp.float32),
        "b_in": s * jax.random.normal(ks[3], (1, H), jnp.float32),
        # ChebConv weights: (L*K, H, H), k-major within a layer (T0, T1, T2).
        "w_cheb": s * jax.random.normal(ks[4], (NUM_LAYERS * K, H, H),
                                        jnp.float32),
        "b_cheb": s * jax.random.normal(ks[5], (NUM_LAYERS, H), jnp.float32),
        "gamma": jnp.ones((NUM_LAYERS, H), jnp.float32),
        "beta": jnp.zeros((NUM_LAYERS, H), jnp.float32),
        # SpectralGNN output_proj Linear(H, H)
        "w_out": s * jax.random.normal(ks[6], (H, H), jnp.float32),
        "b_out": s * jax.random.normal(ks[7], (1, H), jnp.float32),
        # LSTM, gate order (i, f, g, o) stacked on the lane axis: (H, 4H).
        # b_ih + b_hh combined (mathematically identical).
        "w_ih": s * jax.random.normal(ks[8], (H, 4 * H), jnp.float32),
        "w_hh": s * jax.random.normal(ks[9], (H, 4 * H), jnp.float32),
        "b_lstm": s * jax.random.normal(ks[10], (1, 4 * H), jnp.float32),
        # MLP head
        "w1": s * jax.random.normal(ks[11], (H, 2 * H), jnp.float32),
        "b1": s * jax.random.normal(ks[12], (1, 2 * H), jnp.float32),
        "w2": s * jax.random.normal(ks[13], (2 * H, H), jnp.float32),
        "b2": s * jax.random.normal(ks[14], (1, H), jnp.float32),
        "w3": s * jax.random.normal(ks[15], (H, OUT_CH * FORECAST), jnp.float32),
        "b3": s * jax.random.normal(ks[16], (1, OUT_CH * FORECAST), jnp.float32),
    }


def make_graph():
    """Ring graph (+ one chord) per sub-graph; returns dense lhat and pool."""
    N = N_PER_GRAPH * NUM_GRAPHS
    rows, cols = [], []
    for b in range(NUM_GRAPHS):
        off = b * N_PER_GRAPH
        for i in range(N_PER_GRAPH):
            j = (i + 1) % N_PER_GRAPH
            rows += [off + i, off + j]
            cols += [off + j, off + i]
        rows += [off, off + N_PER_GRAPH // 2]
        cols += [off + N_PER_GRAPH // 2, off]
    adj = jnp.zeros((N, N), jnp.float32).at[
        jnp.array(rows), jnp.array(cols)].set(1.0)
    deg = adj.sum(axis=1)
    dinv = jnp.where(deg > 0, 1.0 / jnp.sqrt(deg), 0.0)
    # ChebConv 'sym' normalization with lambda_max = 2:  L_hat = -D^-1/2 A D^-1/2
    lhat = -(dinv[:, None] * adj * dinv[None, :])
    batch = jnp.repeat(jnp.arange(NUM_GRAPHS), N_PER_GRAPH)
    pool = (batch[None, :] == jnp.arange(NUM_GRAPHS)[:, None]).astype(
        jnp.float32) / float(N_PER_GRAPH)
    return lhat, pool


def build_constants(lhat, pool, params):
    """Hoisted one-time construction of all kernel operands (graph structure,
    folded time-encoding bias, packed small parameters)."""
    N = lhat.shape[0]
    eye_t = jnp.eye(HIST, dtype=jnp.float32)
    lhat_big = jnp.kron(eye_t, lhat)                                # (T*N, T*N)
    pool_big = jnp.kron(eye_t, pool)                                # (T*B, T*N)

    # Time encoding (t / history_steps per node of timestep t), folded through
    # the (linear) time encoder and the time-block of the input projection:
    # aug = [x, t*w_time + b_time]; aug @ [w_in_x; w_in_t] + b_in
    #     = x @ w_in_x + t*(w_time@w_in_t) + b_time@w_in_t + b_in
    time_enc = jnp.repeat(jnp.arange(HIST, dtype=jnp.float32) / float(HIST),
                          N)[:, None]                               # (T*N, 1)
    wt_proj = params["w_time"] @ params["w_in_t"]                   # (1, H)
    bt_proj = params["b_time"] @ params["w_in_t"]                   # (1, H)
    in_bias = time_enc * wt_proj + bt_proj + params["b_in"]         # (T*N, H)

    # Pack all H-wide per-layer/per-proj biases into one leading-axis array.
    hb = jnp.concatenate([params["b_cheb"],                         # rows 0..L-1
                          params["gamma"],                          # L..2L-1
                          params["beta"],                           # 2L..3L-1
                          params["b_out"]], axis=0)                 # row 3L

    # Pack MLP head biases (lane-padded to width 2H).
    w2h = 2 * HIDDEN
    def _pad(b):
        return jnp.pad(b, ((0, 0), (0, w2h - b.shape[1])))
    mlp_b = jnp.concatenate([_pad(params["b1"]), _pad(params["b2"]),
                             _pad(params["b3"])], axis=0)           # (3, 2H)

    return {
        "lhat_big": lhat_big, "pool_big": pool_big, "in_bias": in_bias,
        "w_in_x": params["w_in_x"], "w_cheb": params["w_cheb"], "hb": hb,
        "w_out": params["w_out"], "w_ih": params["w_ih"],
        "w_hh": params["w_hh"], "b_lstm": params["b_lstm"],
        "w1": params["w1"], "w2": params["w2"], "w3": params["w3"],
        "mlp_b": mlp_b,
    }


if __name__ == "__main__":
    key = jax.random.PRNGKey(0)
    k_param, k_x = jax.random.split(key)

    params = make_params(k_param)
    lhat, pool = make_graph()
    consts = build_constants(lhat, pool, params)   # built once (hoisted)

    N = N_PER_GRAPH * NUM_GRAPHS
    # history of node-feature snapshots: [HIST, N, IN_CH]
    x_hist = jax.random.normal(k_x, (HIST, N, IN_CH), jnp.float32)

    preds = weather_gnn_forward(x_hist, consts)
    preds = jax.block_until_ready(preds)
    assert preds.shape == (NUM_GRAPHS, FORECAST, OUT_CH)
    print("KERNEL_OK")
</pallas_src>

<mosaic_0001>
module attributes {stable_mosaic.version = 11 : i64} {
  func.func @weather_kernel(%arg0: memref<48x4xf32, #tpu.memory_space<vmem>>, %arg1: memref<48x48xf32, #tpu.memory_space<vmem>>, %arg2: memref<6x48xf32, #tpu.memory_space<vmem>>, %arg3: memref<48x32xf32, #tpu.memory_space<vmem>>, %arg4: memref<4x32xf32, #tpu.memory_space<vmem>>, %arg5: memref<9x32x32xf32, #tpu.memory_space<vmem>>, %arg6: memref<10x32xf32, #tpu.memory_space<vmem>>, %arg7: memref<32x32xf32, #tpu.memory_space<vmem>>, %arg8: memref<32x128xf32, #tpu.memory_space<vmem>>, %arg9: memref<32x128xf32, #tpu.memory_space<vmem>>, %arg10: memref<1x128xf32, #tpu.memory_space<vmem>>, %arg11: memref<32x64xf32, #tpu.memory_space<vmem>>, %arg12: memref<64x32xf32, #tpu.memory_space<vmem>>, %arg13: memref<32x6xf32, #tpu.memory_space<vmem>>, %arg14: memref<3x64xf32, #tpu.memory_space<vmem>>, %arg15: memref<2x6xf32, #tpu.memory_space<vmem>>) attributes {dimension_semantics = [], scalar_prefetch = 0 : i64, scratch_operands = 0 : i64, tpu.core_type = #tpu.core_type<tc>} {
    %c0 = arith.constant 0 : index
    %c0_0 = arith.constant 0 : index
    %0 = vector.load %arg1[%c0, %c0_0] : memref<48x48xf32, #tpu.memory_space<vmem>>, vector<48x48xf32>
    %c0_1 = arith.constant 0 : index
    %c0_2 = arith.constant 0 : index
    %1 = vector.load %arg0[%c0_1, %c0_2] : memref<48x4xf32, #tpu.memory_space<vmem>>, vector<48x4xf32>
    %c0_3 = arith.constant 0 : index
    %c0_4 = arith.constant 0 : index
    %2 = vector.load %arg4[%c0_3, %c0_4] : memref<4x32xf32, #tpu.memory_space<vmem>>, vector<4x32xf32>
    %cst = arith.constant dense<0.000000e+00> : vector<48x32xf32>
    %3 = tpu.matmul %1, %2, %cst {dimension_numbers = #tpu.dot_dimension_numbers<[1], [0], [0], [1], [0, 0, 1, 1], [], []>} : vector<48x4xf32>, vector<4x32xf32>, vector<48x32xf32> -> vector<48x32xf32>
    %c0_5 = arith.constant 0 : index
    %c0_6 = arith.constant 0 : index
    %4 = vector.load %arg3[%c0_5, %c0_6] : memref<48x32xf32, #tpu.memory_space<vmem>>, vector<48x32xf32>
    %5 = arith.addf %3, %4 : vector<48x32xf32>
    %cst_7 = arith.constant dense<0.000000e+00> : vector<48x32xf32>
    %6 = tpu.matmul %0, %5, %cst_7 {dimension_numbers = #tpu.dot_dimension_numbers<[1], [0], [0], [1], [0, 0, 1, 1], [], []>} : vector<48x48xf32>, vector<48x32xf32>, vector<48x32xf32> -> vector<48x32xf32>
    %c0_8 = arith.constant 0 : index
    %c0_9 = arith.constant 0 : index
    %c0_10 = arith.constant 0 : index
    %7 = vector.load %arg5[%c0_8, %c0_9, %c0_10] : memref<9x32x32xf32, #tpu.memory_space<vmem>>, vector<1x32x32xf32>
    %8 = vector.shape_cast %7 : vector<1x32x32xf32> to vector<32x32xf32>
    %cst_11 = arith.constant dense<0.000000e+00> : vector<48x32xf32>
    %9 = tpu.matmul %5, %8, %cst_11 {dimension_numbers = #tpu.dot_dimension_numbers<[1], [0], [0], [1], [0, 0, 1, 1], [], []>} : vector<48x32xf32>, vector<32x32xf32>, vector<48x32xf32> -> vector<48x32xf32>
    %c1 = arith.constant 1 : index
    %c0_12 = arith.constant 0 : index
    %c0_13 = arith.constant 0 : index
    %10 = vector.load %arg5[%c1, %c0_12, %c0_13] : memref<9x32x32xf32, #tpu.memory_space<vmem>>, vector<1x32x32xf32>
    %11 = vector.shape_cast %10 : vector<1x32x32xf32> to vector<32x32xf32>
    %cst_14 = arith.constant dense<0.000000e+00> : vector<48x32xf32>
    %12 = tpu.matmul %6, %11, %cst_14 {dimension_numbers = #tpu.dot_dimension_numbers<[1], [0], [0], [1], [0, 0, 1, 1], [], []>} : vector<48x32xf32>, vector<32x32xf32>, vector<48x32xf32> -> vector<48x32xf32>
    %13 = arith.addf %9, %12 : vector<48x32xf32>
    %cst_15 = arith.constant dense<0.000000e+00> : vector<48x32xf32>
    %14 = tpu.matmul %0, %6, %cst_15 {dimension_numbers = #tpu.dot_dimension_numbers<[1], [0], [0], [1], [0, 0, 1, 1], [], []>} : vector<48x48xf32>, vector<48x32xf32>, vector<48x32xf32> -> vector<48x32xf32>
    %cst_16 = arith.constant 2.000000e+00 : f32
    %15 = vector.broadcast %cst_16 : f32 to vector<48x32xf32>
    %16 = arith.mulf %15, %14 : vector<48x32xf32>
    %17 = arith.subf %16, %5 : vector<48x32xf32>
    %c2 = arith.constant 2 : index
    %c0_17 = arith.constant 0 : index
    %c0_18 = arith.constant 0 : index
    %18 = vector.load %arg5[%c2, %c0_17, %c0_18] : memref<9x32x32xf32, #tpu.memory_space<vmem>>, vector<1x32x32xf32>
    %19 = vector.shape_cast %18 : vector<1x32x32xf32> to vector<32x32xf32>
    %cst_19 = arith.constant dense<0.000000e+00> : vector<48x32xf32>
    %20 = tpu.matmul %17, %19, %cst_19 {dimension_numbers = #tpu.dot_dimension_numbers<[1], [0], [0], [1], [0, 0, 1, 1], [], []>} : vector<48x32xf32>, vector<32x32xf32>, vector<48x32xf32> -> vector<48x32xf32>
    %21 = arith.addf %13, %20 : vector<48x32xf32>
    %c0_20 = arith.constant 0 : index
    %c0_21 = arith.constant 0 : index
    %22 = vector.load %arg6[%c0_20, %c0_21] : memref<10x32xf32, #tpu.memory_space<vmem>>, vector<1x32xf32>
    %23 = vector.broadcast %22 : vector<1x32xf32> to vector<48x32xf32>
    %24 = arith.addf %21, %23 : vector<48x32xf32>
    %cst_22 = arith.constant 0.000000e+00 : f32
    %25 = vector.broadcast %cst_22 : f32 to vector<48x32xf32>
    %26 = arith.maximumf %24, %25 : vector<48x32xf32>
    %27 = arith.addf %26, %5 : vector<48x32xf32>
    %cst_23 = arith.constant dense<0.000000e+00> : vector<48xf32>
    %28 = vector.multi_reduction <add>, %27, %cst_23 [1] : vector<48x32xf32> to vector<48xf32>
    %29 = vector.shape_cast %28 : vector<48xf32> to vector<48x1xf32>
    %cst_24 = arith.constant 3.200000e+01 : f32
    %30 = vector.broadcast %cst_24 : f32 to vector<48x1xf32>
    %31 = arith.divf %29, %30 : vector<48x1xf32>
    %32 = arith.mulf %27, %27 : vector<48x32xf32>
    %cst_25 = arith.constant dense<0.000000e+00> : vector<48xf32>
    %33 = vector.multi_reduction <add>, %32, %cst_25 [1] : vector<48x32xf32> to vector<48xf32>
    %34 = vector.shape_cast %33 : vector<48xf32> to vector<48x1xf32>
    %cst_26 = arith.constant 3.200000e+01 : f32
    %35 = vector.broadcast %cst_26 : f32 to vector<48x1xf32>
    %36 = arith.divf %34, %35 : vector<48x1xf32>
    %37 = arith.mulf %31, %31 : vector<48x1xf32>
    %38 = arith.subf %36, %37 : vector<48x1xf32>
    %cst_27 = arith.constant 9.99999974E-6 : f32
    %39 = vector.broadcast %cst_27 : f32 to vector<48x1xf32>
    %40 = arith.addf %38, %39 : vector<48x1xf32>
    %41 = math.rsqrt %40 : vector<48x1xf32>
    %c3 = arith.constant 3 : index
    %c0_28 = arith.constant 0 : index
    %42 = vector.load %arg6[%c3, %c0_28] : memref<10x32xf32, #tpu.memory_space<vmem>>, vector<1x32xf32>
    %43 = vector.broadcast %41 : vector<48x1xf32> to vector<48x32xf32>
    %44 = vector.broadcast %42 : vector<1x32xf32> to vector<48x32xf32>
    %45 = arith.mulf %43, %44 : vector<48x32xf32>
    %46 = vector.broadcast %31 : vector<48x1xf32> to vector<48x32xf32>
    %47 = arith.subf %27, %46 : vector<48x32xf32>
    %48 = arith.mulf %47, %45 : vector<48x32xf32>
    %c6 = arith.constant 6 : index
    %c0_29 = arith.constant 0 : index
    %49 = vector.load %arg6[%c6, %c0_29] : memref<10x32xf32, #tpu.memory_space<vmem>>, vector<1x32xf32>
    %50 = vector.broadcast %49 : vector<1x32xf32> to vector<48x32xf32>
    %51 = arith.addf %48, %50 : vector<48x32xf32>
    %cst_30 = arith.constant dense<0.000000e+00> : vector<48x32xf32>
    %52 = tpu.matmul %0, %51, %cst_30 {dimension_numbers = #tpu.dot_dimension_numbers<[1], [0], [0], [1], [0, 0, 1, 1], [], []>} : vector<48x48xf32>, vector<48x32xf32>, vector<48x32xf32> -> vector<48x32xf32>
    %c3_31 = arith.constant 3 : index
    %c0_32 = arith.constant 0 : index
    %c0_33 = arith.constant 0 : index
    %53 = vector.load %arg5[%c3_31, %c0_32, %c0_33] : memref<9x32x32xf32, #tpu.memory_space<vmem>>, vector<1x32x32xf32>
    %54 = vector.shape_cast %53 : vector<1x32x32xf32> to vector<32x32xf32>
    %cst_34 = arith.constant dense<0.000000e+00> : vector<48x32xf32>
    %55 = tpu.matmul %51, %54, %cst_34 {dimension_numbers = #tpu.dot_dimension_numbers<[1], [0], [0], [1], [0, 0, 1, 1], [], []>} : vector<48x32xf32>, vector<32x32xf32>, vector<48x32xf32> -> vector<48x32xf32>
    %c4 = arith.constant 4 : index
    %c0_35 = arith.constant 0 : index
    %c0_36 = arith.constant 0 : index
    %56 = vector.load %arg5[%c4, %c0_35, %c0_36] : memref<9x32x32xf32, #tpu.memory_space<vmem>>, vector<1x32x32xf32>
    %57 = vector.shape_cast %56 : vector<1x32x32xf32> to vector<32x32xf32>
    %cst_37 = arith.constant dense<0.000000e+00> : vector<48x32xf32>
    %58 = tpu.matmul %52, %57, %cst_37 {dimension_numbers = #tpu.dot_dimension_numbers<[1], [0], [0], [1], [0, 0, 1, 1], [], []>} : vector<48x32xf32>, vector<32x32xf32>, vector<48x32xf32> -> vector<48x32xf32>
    %59 = arith.addf %55, %58 : vector<48x32xf32>
    %cst_38 = arith.constant dense<0.000000e+00> : vector<48x32xf32>
    %60 = tpu.matmul %0, %52, %cst_38 {dimension_numbers = #tpu.dot_dimension_numbers<[1], [0], [0], [1], [0, 0, 1, 1], [], []>} : vector<48x48xf32>, vector<48x32xf32>, vector<48x32xf32> -> vector<48x32xf32>
    %cst_39 = arith.constant 2.000000e+00 : f32
    %61 = vector.broadcast %cst_39 : f32 to vector<48x32xf32>
    %62 = arith.mulf %61, %60 : vector<48x32xf32>
    %63 = arith.subf %62, %51 : vector<48x32xf32>
    %c5 = arith.constant 5 : index
    %c0_40 = arith.constant 0 : index
    %c0_41 = arith.constant 0 : index
    %64 = vector.load %arg5[%c5, %c0_40, %c0_41] : memref<9x32x32xf32, #tpu.memory_space<vmem>>, vector<1x32x32xf32>
    %65 = vector.shape_cast %64 : vector<1x32x32xf32> to vector<32x32xf32>
    %cst_42 = arith.constant dense<0.000000e+00> : vector<48x32xf32>
    %66 = tpu.matmul %63, %65, %cst_42 {dimension_numbers = #tpu.dot_dimension_numbers<[1], [0], [0], [1], [0, 0, 1, 1], [], []>} : vector<48x32xf32>, vector<32x32xf32>, vector<48x32xf32> -> vector<48x32xf32>
    %67 = arith.addf %59, %66 : vector<48x32xf32>
    %c1_43 = arith.constant 1 : index
    %c0_44 = arith.constant 0 : index
    %68 = vector.load %arg6[%c1_43, %c0_44] : memref<10x32xf32, #tpu.memory_space<vmem>>, vector<1x32xf32>
    %69 = vector.broadcast %68 : vector<1x32xf32> to vector<48x32xf32>
    %70 = arith.addf %67, %69 : vector<48x32xf32>
    %cst_45 = arith.constant 0.000000e+00 : f32
    %71 = vector.broadcast %cst_45 : f32 to vector<48x32xf32>
    %72 = arith.maximumf %70, %71 : vector<48x32xf32>
    %73 = arith.addf %72, %51 : vector<48x32xf32>
    %cst_46 = arith.constant dense<0.000000e+00> : vector<48xf32>
    %74 = vector.multi_reduction <add>, %73, %cst_46 [1] : vector<48x32xf32> to vector<48xf32>
    %75 = vector.shape_cast %74 : vector<48xf32> to vector<48x1xf32>
    %cst_47 = arith.constant 3.200000e+01 : f32
    %76 = vector.broadcast %cst_47 : f32 to vector<48x1xf32>
    %77 = arith.divf %75, %76 : vector<48x1xf32>
    %78 = arith.mulf %73, %73 : vector<48x32xf32>
    %cst_48 = arith.constant dense<0.000000e+00> : vector<48xf32>
    %79 = vector.multi_reduction <add>, %78, %cst_48 [1] : vector<48x32xf32> to vector<48xf32>
    %80 = vector.shape_cast %79 : vector<48xf32> to vector<48x1xf32>
    %cst_49 = arith.constant 3.200000e+01 : f32
    %81 = vector.broadcast %cst_49 : f32 to vector<48x1xf32>
    %82 = arith.divf %80, %81 : vector<48x1xf32>
    %83 = arith.mulf %77, %77 : vector<48x1xf32>
    %84 = arith.subf %82, %83 : vector<48x1xf32>
    %cst_50 = arith.constant 9.99999974E-6 : f32
    %85 = vector.broadcast %cst_50 : f32 to vector<48x1xf32>
    %86 = arith.addf %84, %85 : vector<48x1xf32>
    %87 = math.rsqrt %86 : vector<48x1xf32>
    %c4_51 = arith.constant 4 : index
    %c0_52 = arith.constant 0 : index
    %88 = vector.load %arg6[%c4_51, %c0_52] : memref<10x32xf32, #tpu.memory_space<vmem>>, vector<1x32xf32>
    %89 = vector.broadcast %87 : vector<48x1xf32> to vector<48x32xf32>
    %90 = vector.broadcast %88 : vector<1x32xf32> to vector<48x32xf32>
    %91 = arith.mulf %89, %90 : vector<48x32xf32>
    %92 = vector.broadcast %77 : vector<48x1xf32> to vector<48x32xf32>
    %93 = arith.subf %73, %92 : vector<48x32xf32>
    %94 = arith.mulf %93, %91 : vector<48x32xf32>
    %c7 = arith.constant 7 : index
    %c0_53 = arith.constant 0 : index
    %95 = vector.load %arg6[%c7, %c0_53] : memref<10x32xf32, #tpu.memory_space<vmem>>, vector<1x32xf32>
    %96 = vector.broadcast %95 : vector<1x32xf32> to vector<48x32xf32>
    %97 = arith.addf %94, %96 : vector<48x32xf32>
    %cst_54 = arith.constant dense<0.000000e+00> : vector<48x32xf32>
    %98 = tpu.matmul %0, %97, %cst_54 {dimension_numbers = #tpu.dot_dimension_numbers<[1], [0], [0], [1], [0, 0, 1, 1], [], []>} : vector<48x48xf32>, vector<48x32xf32>, vector<48x32xf32> -> vector<48x32xf32>
    %c6_55 = arith.constant 6 : index
    %c0_56 = arith.constant 0 : index
    %c0_57 = arith.constant 0 : index
    %99 = vector.load %arg5[%c6_55, %c0_56, %c0_57] : memref<9x32x32xf32, #tpu.memory_space<vmem>>, vector<1x32x32xf32>
    %100 = vector.shape_cast %99 : vector<1x32x32xf32> to vector<32x32xf32>
    %cst_58 = arith.constant dense<0.000000e+00> : vector<48x32xf32>
    %101 = tpu.matmul %97, %100, %cst_58 {dimension_numbers = #tpu.dot_dimension_numbers<[1], [0], [0], [1], [0, 0, 1, 1], [], []>} : vector<48x32xf32>, vector<32x32xf32>, vector<48x32xf32> -> vector<48x32xf32>
    %c7_59 = arith.constant 7 : index
    %c0_60 = arith.constant 0 : index
    %c0_61 = arith.constant 0 : index
    %102 = vector.load %arg5[%c7_59, %c0_60, %c0_61] : memref<9x32x32xf32, #tpu.memory_space<vmem>>, vector<1x32x32xf32>
    %103 = vector.shape_cast %102 : vector<1x32x32xf32> to vector<32x32xf32>
    %cst_62 = arith.constant dense<0.000000e+00> : vector<48x32xf32>
    %104 = tpu.matmul %98, %103, %cst_62 {dimension_numbers = #tpu.dot_dimension_numbers<[1], [0], [0], [1], [0, 0, 1, 1], [], []>} : vector<48x32xf32>, vector<32x32xf32>, vector<48x32xf32> -> vector<48x32xf32>
    %105 = arith.addf %101, %104 : vector<48x32xf32>
    %cst_63 = arith.constant dense<0.000000e+00> : vector<48x32xf32>
    %106 = tpu.matmul %0, %98, %cst_63 {dimension_numbers = #tpu.dot_dimension_numbers<[1], [0], [0], [1], [0, 0, 1, 1], [], []>} : vector<48x48xf32>, vector<48x32xf32>, vector<48x32xf32> -> vector<48x32xf32>
    %cst_64 = arith.constant 2.000000e+00 : f32
    %107 = vector.broadcast %cst_64 : f32 to vector<48x32xf32>
    %108 = arith.mulf %107, %106 : vector<48x32xf32>
    %109 = arith.subf %108, %97 : vector<48x32xf32>
    %c8 = arith.constant 8 : index
    %c0_65 = arith.constant 0 : index
    %c0_66 = arith.constant 0 : index
    %110 = vector.load %arg5[%c8, %c0_65, %c0_66] : memref<9x32x32xf32, #tpu.memory_space<vmem>>, vector<1x32x32xf32>
    %111 = vector.shape_cast %110 : vector<1x32x32xf32> to vector<32x32xf32>
    %cst_67 = arith.constant dense<0.000000e+00> : vector<48x32xf32>
    %112 = tpu.matmul %109, %111, %cst_67 {dimension_numbers = #tpu.dot_dimension_numbers<[1], [0], [0], [1], [0, 0, 1, 1], [], []>} : vector<48x32xf32>, vector<32x32xf32>, vector<48x32xf32> -> vector<48x32xf32>
    %113 = arith.addf %105, %112 : vector<48x32xf32>
    %c2_68 = arith.constant 2 : index
    %c0_69 = arith.constant 0 : index
    %114 = vector.load %arg6[%c2_68, %c0_69] : memref<10x32xf32, #tpu.memory_space<vmem>>, vector<1x32xf32>
    %115 = vector.broadcast %114 : vector<1x32xf32> to vector<48x32xf32>
    %116 = arith.addf %113, %115 : vector<48x32xf32>
    %cst_70 = arith.constant 0.000000e+00 : f32
    %117 = vector.broadcast %cst_70 : f32 to vector<48x32xf32>
    %118 = arith.maximumf %116, %117 : vector<48x32xf32>
    %119 = arith.addf %118, %97 : vector<48x32xf32>
    %cst_71 = arith.constant dense<0.000000e+00> : vector<48xf32>
    %120 = vector.multi_reduction <add>, %119, %cst_71 [1] : vector<48x32xf32> to vector<48xf32>
    %121 = vector.shape_cast %120 : vector<48xf32> to vector<48x1xf32>
    %cst_72 = arith.constant 3.200000e+01 : f32
    %122 = vector.broadcast %cst_72 : f32 to vector<48x1xf32>
    %123 = arith.divf %121, %122 : vector<48x1xf32>
    %124 = arith.mulf %119, %119 : vector<48x32xf32>
    %cst_73 = arith.constant dense<0.000000e+00> : vector<48xf32>
    %125 = vector.multi_reduction <add>, %124, %cst_73 [1] : vector<48x32xf32> to vector<48xf32>
    %126 = vector.shape_cast %125 : vector<48xf32> to vector<48x1xf32>
    %cst_74 = arith.constant 3.200000e+01 : f32
    %127 = vector.broadcast %cst_74 : f32 to vector<48x1xf32>
    %128 = arith.divf %126, %127 : vector<48x1xf32>
    %129 = arith.mulf %123, %123 : vector<48x1xf32>
    %130 = arith.subf %128, %129 : vector<48x1xf32>
    %cst_75 = arith.constant 9.99999974E-6 : f32
    %131 = vector.broadcast %cst_75 : f32 to vector<48x1xf32>
    %132 = arith.addf %130, %131 : vector<48x1xf32>
    %133 = math.rsqrt %132 : vector<48x1xf32>
    %c5_76 = arith.constant 5 : index
    %c0_77 = arith.constant 0 : index
    %134 = vector.load %arg6[%c5_76, %c0_77] : memref<10x32xf32, #tpu.memory_space<vmem>>, vector<1x32xf32>
    %135 = vector.broadcast %133 : vector<48x1xf32> to vector<48x32xf32>
    %136 = vector.broadcast %134 : vector<1x32xf32> to vector<48x32xf32>
    %137 = arith.mulf %135, %136 : vector<48x32xf32>
    %138 = vector.broadcast %123 : vector<48x1xf32> to vector<48x32xf32>
    %139 = arith.subf %119, %138 : vector<48x32xf32>
    %140 = arith.mulf %139, %137 : vector<48x32xf32>
    %c8_78 = arith.constant 8 : index
    %c0_79 = arith.constant 0 : index
    %141 = vector.load %arg6[%c8_78, %c0_79] : memref<10x32xf32, #tpu.memory_space<vmem>>, vector<1x32xf32>
    %142 = vector.broadcast %141 : vector<1x32xf32> to vector<48x32xf32>
    %143 = arith.addf %140, %142 : vector<48x32xf32>
    %c0_80 = arith.constant 0 : index
    %c0_81 = arith.constant 0 : index
    %144 = vector.load %arg7[%c0_80, %c0_81] : memref<32x32xf32, #tpu.memory_space<vmem>>, vector<32x32xf32>
    %cst_82 = arith.constant dense<0.000000e+00> : vector<48x32xf32>
    %145 = tpu.matmul %143, %144, %cst_82 {dimension_numbers = #tpu.dot_dimension_numbers<[1], [0], [0], [1], [0, 0, 1, 1], [], []>} : vector<48x32xf32>, vector<32x32xf32>, vector<48x32xf32> -> vector<48x32xf32>
    %c9 = arith.constant 9 : index
    %c0_83 = arith.constant 0 : index
    %146 = vector.load %arg6[%c9, %c0_83] : memref<10x32xf32, #tpu.memory_space<vmem>>, vector<1x32xf32>
    %147 = vector.broadcast %146 : vector<1x32xf32> to vector<48x32xf32>
    %148 = arith.addf %145, %147 : vector<48x32xf32>
    %c0_84 = arith.constant 0 : index
    %c0_85 = arith.constant 0 : index
    %149 = vector.load %arg2[%c0_84, %c0_85] : memref<6x48xf32, #tpu.memory_space<vmem>>, vector<6x48xf32>
    %cst_86 = arith.constant dense<0.000000e+00> : vector<6x32xf32>
    %150 = tpu.matmul %149, %148, %cst_86 {dimension_numbers = #tpu.dot_dimension_numbers<[1], [0], [0], [1], [0, 0, 1, 1], [], []>} : vector<6x48xf32>, vector<48x32xf32>, vector<6x32xf32> -> vector<6x32xf32>
    %c0_87 = arith.constant 0 : index
    %c0_88 = arith.constant 0 : index
    %151 = vector.load %arg8[%c0_87, %c0_88] : memref<32x128xf32, #tpu.memory_space<vmem>>, vector<32x128xf32>
    %cst_89 = arith.constant dense<0.000000e+00> : vector<6x128xf32>
    %152 = tpu.matmul %150, %151, %cst_89 {dimension_numbers = #tpu.dot_dimension_numbers<[1], [0], [0], [1], [0, 0, 1, 1], [], []>} : vector<6x32xf32>, vector<32x128xf32>, vector<6x128xf32> -> vector<6x128xf32>
    %c0_90 = arith.constant 0 : index
    %c0_91 = arith.constant 0 : index
    %153 = vector.load %arg10[%c0_90, %c0_91] : memref<1x128xf32, #tpu.memory_space<vmem>>, vector<1x128xf32>
    %154 = vector.broadcast %153 : vector<1x128xf32> to vector<6x128xf32>
    %155 = arith.addf %152, %154 : vector<6x128xf32>
    %cst_92 = arith.constant 0.000000e+00 : f32
    %156 = vector.broadcast %cst_92 : f32 to vector<2x32xf32>
    %cst_93 = arith.constant 0.000000e+00 : f32
    %157 = vector.broadcast %cst_93 : f32 to vector<2x32xf32>
    %158 = vector.extract_strided_slice %155 {offsets = [0, 0], sizes = [2, 128], strides = [1, 1]} : vector<6x128xf32> to vector<2x128xf32>
    %c0_94 = arith.constant 0 : index
    %c0_95 = arith.constant 0 : index
    %159 = vector.load %arg9[%c0_94, %c0_95] : memref<32x128xf32, #tpu.memory_space<vmem>>, vector<32x128xf32>
    %cst_96 = arith.constant dense<0.000000e+00> : vector<2x128xf32>
    %160 = tpu.matmul %156, %159, %cst_96 {dimension_numbers = #tpu.dot_dimension_numbers<[1], [0], [0], [1], [0, 0, 1, 1], [], []>} : vector<2x32xf32>, vector<32x128xf32>, vector<2x128xf32> -> vector<2x128xf32>
    %161 = arith.addf %158, %160 : vector<2x128xf32>
    %162 = vector.extract_strided_slice %161 {offsets = [0, 0], sizes = [2, 32], strides = [1, 1]} : vector<2x128xf32> to vector<2x32xf32>
    %163 = arith.negf %162 : vector<2x32xf32>
    %164 = math.exp %163 : vector<2x32xf32>
    %cst_97 = arith.constant 1.000000e+00 : f32
    %165 = vector.broadcast %cst_97 : f32 to vector<2x32xf32>
    %166 = arith.addf %165, %164 : vector<2x32xf32>
    %167 = arith.divf %165, %166 : vector<2x32xf32>
    %168 = vector.extract_strided_slice %161 {offsets = [0, 32], sizes = [2, 32], strides = [1, 1]} : vector<2x128xf32> to vector<2x32xf32>
    %169 = arith.negf %168 : vector<2x32xf32>
    %170 = math.exp %169 : vector<2x32xf32>
    %cst_98 = arith.constant 1.000000e+00 : f32
    %171 = vector.broadcast %cst_98 : f32 to vector<2x32xf32>
    %172 = arith.addf %171, %170 : vector<2x32xf32>
    %173 = arith.divf %171, %172 : vector<2x32xf32>
    %174 = vector.extract_strided_slice %161 {offsets = [0, 64], sizes = [2, 32], strides = [1, 1]} : vector<2x128xf32> to vector<2x32xf32>
    %175 = math.tanh %174 : vector<2x32xf32>
    %176 = vector.extract_strided_slice %161 {offsets = [0, 96], sizes = [2, 32], strides = [1, 1]} : vector<2x128xf32> to vector<2x32xf32>
    %177 = arith.negf %176 : vector<2x32xf32>
    %178 = math.exp %177 : vector<2x32xf32>
    %cst_99 = arith.constant 1.000000e+00 : f32
    %179 = vector.broadcast %cst_99 : f32 to vector<2x32xf32>
    %180 = arith.addf %179, %178 : vector<2x32xf32>
    %181 = arith.divf %179, %180 : vector<2x32xf32>
    %182 = arith.mulf %173, %157 : vector<2x32xf32>
    %183 = arith.mulf %167, %175 : vector<2x32xf32>
    %184 = arith.addf %182, %183 : vector<2x32xf32>
    %185 = math.tanh %184 : vector<2x32xf32>
    %186 = arith.mulf %181, %185 : vector<2x32xf32>
    %187 = vector.extract_strided_slice %155 {offsets = [2, 0], sizes = [2, 128], strides = [1, 1]} : vector<6x128xf32> to vector<2x128xf32>
    %c0_100 = arith.constant 0 : index
    %c0_101 = arith.constant 0 : index
    %188 = vector.load %arg9[%c0_100, %c0_101] : memref<32x128xf32, #tpu.memory_space<vmem>>, vector<32x128xf32>
    %cst_102 = arith.constant dense<0.000000e+00> : vector<2x128xf32>
    %189 = tpu.matmul %186, %188, %cst_102 {dimension_numbers = #tpu.dot_dimension_numbers<[1], [0], [0], [1], [0, 0, 1, 1], [], []>} : vector<2x32xf32>, vector<32x128xf32>, vector<2x128xf32> -> vector<2x128xf32>
    %190 = arith.addf %187, %189 : vector<2x128xf32>
    %191 = vector.extract_strided_slice %190 {offsets = [0, 0], sizes = [2, 32], strides = [1, 1]} : vector<2x128xf32> to vector<2x32xf32>
    %192 = arith.negf %191 : vector<2x32xf32>
    %193 = math.exp %192 : vector<2x32xf32>
    %cst_103 = arith.constant 1.000000e+00 : f32
    %194 = vector.broadcast %cst_103 : f32 to vector<2x32xf32>
    %195 = arith.addf %194, %193 : vector<2x32xf32>
    %196 = arith.divf %194, %195 : vector<2x32xf32>
    %197 = vector.extract_strided_slice %190 {offsets = [0, 32], sizes = [2, 32], strides = [1, 1]} : vector<2x128xf32> to vector<2x32xf32>
    %198 = arith.negf %197 : vector<2x32xf32>
    %199 = math.exp %198 : vector<2x32xf32>
    %cst_104 = arith.constant 1.000000e+00 : f32
    %200 = vector.broadcast %cst_104 : f32 to vector<2x32xf32>
    %201 = arith.addf %200, %199 : vector<2x32xf32>
    %202 = arith.divf %200, %201 : vector<2x32xf32>
    %203 = vector.extract_strided_slice %190 {offsets = [0, 64], sizes = [2, 32], strides = [1, 1]} : vector<2x128xf32> to vector<2x32xf32>
    %204 = math.tanh %203 : vector<2x32xf32>
    %205 = vector.extract_strided_slice %190 {offsets = [0, 96], sizes = [2, 32], strides = [1, 1]} : vector<2x128xf32> to vector<2x32xf32>
    %206 = arith.negf %205 : vector<2x32xf32>
    %207 = math.exp %206 : vector<2x32xf32>
    %cst_105 = arith.constant 1.000000e+00 : f32
    %208 = vector.broadcast %cst_105 : f32 to vector<2x32xf32>
    %209 = arith.addf %208, %207 : vector<2x32xf32>
    %210 = arith.divf %208, %209 : vector<2x32xf32>
    %211 = arith.mulf %202, %184 : vector<2x32xf32>
    %212 = arith.mulf %196, %204 : vector<2x32xf32>
    %213 = arith.addf %211, %212 : vector<2x32xf32>
    %214 = math.tanh %213 : vector<2x32xf32>
    %215 = arith.mulf %210, %214 : vector<2x32xf32>
    %216 = vector.extract_strided_slice %155 {offsets = [4, 0], sizes = [2, 128], strides = [1, 1]} : vector<6x128xf32> to vector<2x128xf32>
    %c0_106 = arith.constant 0 : index
    %c0_107 = arith.constant 0 : index
    %217 = vector.load %arg9[%c0_106, %c0_107] : memref<32x128xf32, #tpu.memory_space<vmem>>, vector<32x128xf32>
    %cst_108 = arith.constant dense<0.000000e+00> : vector<2x128xf32>
    %218 = tpu.matmul %215, %217, %cst_108 {dimension_numbers = #tpu.dot_dimension_numbers<[1], [0], [0], [1], [0, 0, 1, 1], [], []>} : vector<2x32xf32>, vector<32x128xf32>, vector<2x128xf32> -> vector<2x128xf32>
    %219 = arith.addf %216, %218 : vector<2x128xf32>
    %220 = vector.extract_strided_slice %219 {offsets = [0, 0], sizes = [2, 32], strides = [1, 1]} : vector<2x128xf32> to vector<2x32xf32>
    %221 = arith.negf %220 : vector<2x32xf32>
    %222 = math.exp %221 : vector<2x32xf32>
    %cst_109 = arith.constant 1.000000e+00 : f32
    %223 = vector.broadcast %cst_109 : f32 to vector<2x32xf32>
    %224 = arith.addf %223, %222 : vector<2x32xf32>
    %225 = arith.divf %223, %224 : vector<2x32xf32>
    %226 = vector.extract_strided_slice %219 {offsets = [0, 32], sizes = [2, 32], strides = [1, 1]} : vector<2x128xf32> to vector<2x32xf32>
    %227 = arith.negf %226 : vector<2x32xf32>
    %228 = math.exp %227 : vector<2x32xf32>
    %cst_110 = arith.constant 1.000000e+00 : f32
    %229 = vector.broadcast %cst_110 : f32 to vector<2x32xf32>
    %230 = arith.addf %229, %228 : vector<2x32xf32>
    %231 = arith.divf %229, %230 : vector<2x32xf32>
    %232 = vector.extract_strided_slice %219 {offsets = [0, 64], sizes = [2, 32], strides = [1, 1]} : vector<2x128xf32> to vector<2x32xf32>
    %233 = math.tanh %232 : vector<2x32xf32>
    %234 = vector.extract_strided_slice %219 {offsets = [0, 96], sizes = [2, 32], strides = [1, 1]} : vector<2x128xf32> to vector<2x32xf32>
    %235 = arith.negf %234 : vector<2x32xf32>
    %236 = math.exp %235 : vector<2x32xf32>
    %cst_111 = arith.constant 1.000000e+00 : f32
    %237 = vector.broadcast %cst_111 : f32 to vector<2x32xf32>
    %238 = arith.addf %237, %236 : vector<2x32xf32>
    %239 = arith.divf %237, %238 : vector<2x32xf32>
    %240 = arith.mulf %231, %213 : vector<2x32xf32>
    %241 = arith.mulf %225, %233 : vector<2x32xf32>
    %242 = arith.addf %240, %241 : vector<2x32xf32>
    %243 = math.tanh %242 : vector<2x32xf32>
    %244 = arith.mulf %239, %243 : vector<2x32xf32>
    %c0_112 = arith.constant 0 : index
    %c0_113 = arith.constant 0 : index
    %245 = vector.load %arg14[%c0_112, %c0_113] : memref<3x64xf32, #tpu.memory_space<vmem>>, vector<1x64xf32>
    %c1_114 = arith.constant 1 : index
    %c0_115 = arith.constant 0 : index
    %246 = vector.load %arg14[%c1_114, %c0_115] : memref<3x64xf32, #tpu.memory_space<vmem>>, vector<1x32xf32>
    %c2_116 = arith.constant 2 : index
    %c0_117 = arith.constant 0 : index
    %247 = vector.load %arg14[%c2_116, %c0_117] : memref<3x64xf32, #tpu.memory_space<vmem>>, vector<1x6xf32>
    %c0_118 = arith.constant 0 : index
    %c0_119 = arith.constant 0 : index
    %248 = vector.load %arg11[%c0_118, %c0_119] : memref<32x64xf32, #tpu.memory_space<vmem>>, vector<32x64xf32>
    %cst_120 = arith.constant dense<0.000000e+00> : vector<2x64xf32>
    %249 = tpu.matmul %244, %248, %cst_120 {dimension_numbers = #tpu.dot_dimension_numbers<[1], [0], [0], [1], [0, 0, 1, 1], [], []>} : vector<2x32xf32>, vector<32x64xf32>, vector<2x64xf32> -> vector<2x64xf32>
    %250 = vector.broadcast %245 : vector<1x64xf32> to vector<2x64xf32>
    %251 = arith.addf %249, %250 : vector<2x64xf32>
    %cst_121 = arith.constant 0.000000e+00 : f32
    %252 = vector.broadcast %cst_121 : f32 to vector<2x64xf32>
    %253 = arith.maximumf %251, %252 : vector<2x64xf32>
    %c0_122 = arith.constant 0 : index
    %c0_123 = arith.constant 0 : index
    %254 = vector.load %arg12[%c0_122, %c0_123] : memref<64x32xf32, #tpu.memory_space<vmem>>, vector<64x32xf32>
    %cst_124 = arith.constant dense<0.000000e+00> : vector<2x32xf32>
    %255 = tpu.matmul %253, %254, %cst_124 {dimension_numbers = #tpu.dot_dimension_numbers<[1], [0], [0], [1], [0, 0, 1, 1], [], []>} : vector<2x64xf32>, vector<64x32xf32>, vector<2x32xf32> -> vector<2x32xf32>
    %256 = vector.broadcast %246 : vector<1x32xf32> to vector<2x32xf32>
    %257 = arith.addf %255, %256 : vector<2x32xf32>
    %cst_125 = arith.constant 0.000000e+00 : f32
    %258 = vector.broadcast %cst_125 : f32 to vector<2x32xf32>
    %259 = arith.maximumf %257, %258 : vector<2x32xf32>
    %c0_126 = arith.constant 0 : index
    %c0_127 = arith.constant 0 : index
    %260 = vector.load %arg13[%c0_126, %c0_127] : memref<32x6xf32, #tpu.memory_space<vmem>>, vector<32x6xf32>
    %cst_128 = arith.constant dense<0.000000e+00> : vector<2x6xf32>
    %261 = tpu.matmul %259, %260, %cst_128 {dimension_numbers = #tpu.dot_dimension_numbers<[1], [0], [0], [1], [0, 0, 1, 1], [], []>} : vector<2x32xf32>, vector<32x6xf32>, vector<2x6xf32> -> vector<2x6xf32>
    %262 = vector.broadcast %247 : vector<1x6xf32> to vector<2x6xf32>
    %263 = arith.addf %261, %262 : vector<2x6xf32>
    %c0_129 = arith.constant 0 : index
    %c0_130 = arith.constant 0 : index
    %264 = vector.load %arg15[%c0_129, %c0_130] : memref<2x6xf32, #tpu.memory_space<vmem>>, vector<2x6xf32>
    tpu.vector_store %arg15[%c0_129, %c0_130], %263 {strides = array<i32>} : memref<2x6xf32, #tpu.memory_space<vmem>>, vector<2x6xf32>,
    return
  }
}

</mosaic_0001>

<bundles_post_ra>
// kernel: weather_gnn_forward.1
= control target key start
LH: loop header
LB: loop body
LE: loop exit
PB: predicated region body
PF: predicated region fallthrough
CT: control target
= control target key end

     0   :  { %20 = vsyncpa [#allocation3], 0  ;;  %s5366_s0 = inlined_call_operand.vmem [shape: f32[48,4], index: 0, kind: input, shape index: {}]   ;;  %s5367_s1 = inlined_call_operand.hbm [shape: f32[48,48], index: 1, kind: input, shape index: {}]   ;;  %s5368_s2 = inlined_call_operand.hbm [shape: f32[6,48], index: 2, kind: input, shape index: {}]   ;;  %s5369_s3 = inlined_call_operand.vmem [shape: f32[48,32], index: 3, kind: input, shape index: {}]   ;;  %s5370_s4 = inlined_call_operand.vmem [shape: f32[4,32], index: 4, kind: input, shape index: {}]   ;;  %s5371_s5 = inlined_call_operand.vmem [shape: f32[9,32,32], index: 5, kind: input, shape index: {}]   ;;  %s5372_s6 = inlined_call_operand.hbm [shape: f32[10,32], index: 6, kind: input, shape index: {}]   ;;  %s5373_s7 = inlined_call_operand.vmem [shape: f32[32,32], index: 7, kind: input, shape index: {}]   ;;  %s5374_s8 = inlined_call_operand.hbm [shape: f32[32,128], index: 8, kind: input, shape index: {}]   ;;  %s5375_s9 = inlined_call_operand.hbm [shape: f32[32,128], index: 9, kind: input, shape index: {}]   ;;  %s5376_s10 = inlined_call_operand.vmem [shape: f32[1,128], index: 10, kind: input, shape index: {}]   ;;  %s5377_s11 = inlined_call_operand.hbm [shape: f32[32,64], index: 11, kind: input, shape index: {}]   ;;  %s5378_s12 = inlined_call_operand.vmem [shape: f32[64,32], index: 12, kind: input, shape index: {}]   ;;  %s5379_s13 = inlined_call_operand.vmem [shape: f32[32,6], index: 13, kind: input, shape index: {}]   ;;  %s5380_s14 = inlined_call_operand.hbm [shape: f32[3,64], index: 14, kind: input, shape index: {}]   ;;  %s5381_s15 = inlined_call_operand.vmem [shape: f32[2,6], index: 15, kind: output, shape index: {}]  }
   0x1   :  { %21 = vsyncpa [#allocation5], 0 }
   0x2   :  { %22 = vsyncpa [#allocation8], 0 }
   0x3   :  { %23 = vsyncpa [#allocation11], 0  ;;  %s4527_s18 = smov [#allocation4]   ;;  %s4365_s22 = scalar_lea.hbm %s5368_s2, 128 }
   0x4   :  { %s44_s19 = sshll.u32 %s4527_s18, 4  ;;  %p4366_p0 = scmp.ne.s32.totalorder %s5368_s2, %s4365_s22  ;;  %s45_s19 = int_to_ptr.vmem [resolvable:$true] %s44_s19 }
   0x5   :  { %p4369_p1 = scmp.lt.u32.totalorder %s4365_s22, %s5368_s2 }
   0x7   :  { %p4371_p2 = pnand %p4369_p1, %p4366_p0 }
   0x9   :  { %4374 = shalt.err (!%p4371_p2)
}
   0xa   :  { %s4375_s27 = scalar_lea.vmem %s45_s19, 128  ;;  %p4380_p4 = scmp.lt.s32.totalorder %s45_s19, %s45_s19 }
   0xb   :  { %p4376_p3 = scmp.ne.s32.totalorder %s45_s19, %s4375_s27  ;;  %p4381_p5 = scmp.lt.s32.totalorder %s4375_s27, %s4375_s27 }
   0xd   :  { %p4382_p6 = por %p4381_p5, %p4380_p4 }
   0xf   :  { %p4383_p7 = pnand %p4382_p6, %p4376_p3 }
  0x11   :  { %4386 = shalt.err (!%p4383_p7)
}
  0x12   :  { %47 = dma.hbm_to_vmem [thread:$0]  %s5368_s2, 128, %s45_s19, [#allocation5]  }
  0x13   :  { %s4528_s30 = smov [#allocation7]   ;;  %s4529_s17 = smov [#allocation10]  }
  0x14   :  { %s73_s16 = sshll.u32 %s4528_s30, 4  ;;  %s99_s18 = sshll.u32 %s4529_s17, 4  ;;  %s74_s16 = int_to_ptr.vmem [resolvable:$true] %s73_s16  ;;  %s100_s18 = int_to_ptr.vmem [resolvable:$true] %s99_s18 }
  0x15   :  { %s4387_s22 = scalar_lea.hbm %s5374_s8, 512 }
  0x16   :  { %p4388_p8 = scmp.ne.s32.totalorder %s5374_s8, %s4387_s22  ;;  %p4391_p9 = scmp.lt.u32.totalorder %s4387_s22, %s5374_s8 }
  0x18   :  { %p4393_p10 = pnand %p4391_p9, %p4388_p8 }
  0x1a   :  { %4396 = shalt.err (!%p4393_p10)
}
  0x1b   :  { %s4397_s2 = scalar_lea.vmem %s74_s16, 512  ;;  %p4402_p12 = scmp.lt.s32.totalorder %s74_s16, %s74_s16 }
  0x1c   :  { %p4398_p11 = scmp.ne.s32.totalorder %s74_s16, %s4397_s2  ;;  %p4403_p13 = scmp.lt.s32.totalorder %s4397_s2, %s4397_s2 }
  0x1e   :  { %p4404_p0 = por %p4403_p13, %p4402_p12 }
  0x20   :  { %p4405_p1 = pnand %p4404_p0, %p4398_p11 }
  0x22   :  { %4408 = shalt.err (!%p4405_p1)
}
  0x23   :  { %s4530_s19 = smov 128   ;;  %s4531_s27 = smov 8  }
  0x24   :  { %79 = dma.hbm_to_vmem [thread:$0]  %s5374_s8, 512, %s74_s16, [#allocation8], %s4530_s19, %s4530_s19, %s4531_s27  }
  0x25   :  { %s4409_s20 = scalar_lea.hbm %s5377_s11, 512 }
  0x26   :  { %p4410_p2 = scmp.ne.s32.totalorder %s5377_s11, %s4409_s20  ;;  %p4413_p3 = scmp.lt.u32.totalorder %s4409_s20, %s5377_s11 }
  0x28   :  { %p4415_p4 = pnand %p4413_p3, %p4410_p2 }
  0x2a   :  { %4418 = shalt.err (!%p4415_p4)
}
  0x2b   :  { %s4419_s25 = scalar_lea.vmem %s100_s18, 512  ;;  %p4424_p6 = scmp.lt.s32.totalorder %s100_s18, %s100_s18 }
  0x2c   :  { %p4420_p5 = scmp.ne.s32.totalorder %s100_s18, %s4419_s25  ;;  %p4425_p7 = scmp.lt.s32.totalorder %s4419_s25, %s4419_s25 }
  0x2e   :  { %p4426_p8 = por %p4425_p7, %p4424_p6 }
  0x30   :  { %p4427_p9 = pnand %p4426_p8, %p4420_p5 }
  0x32   :  { %4430 = shalt.err (!%p4427_p9)
}
  0x33   :  { %105 = dma.hbm_to_vmem [thread:$0]  %s5377_s11, 512, %s100_s18, [#allocation11], %s4530_s19, %s4530_s19, %s4531_s27  }
  0x34   :  { %s4532_s26 = smov [#allocation2]   ;;  %s4533_s28 = smov [#allocation6]  }
  0x35   :  { %s31_s2 = sshll.u32 %s4532_s26, 4  ;;  %s59_s29 = sshll.u32 %s4533_s28, 4  ;;  %s32_s2 = int_to_ptr.vmem [resolvable:$true] %s31_s2  ;;  %s60_s29 = int_to_ptr.vmem [resolvable:$true] %s59_s29 }
  0x36   :  { %s4431_s20 = scalar_lea.hbm %s5367_s1, 768 }
  0x37   :  { %p4432_p10 = scmp.ne.s32.totalorder %s5367_s1, %s4431_s20  ;;  %p4435_p11 = scmp.lt.u32.totalorder %s4431_s20, %s5367_s1 }
  0x39   :  { %p4437_p12 = pnand %p4435_p11, %p4432_p10 }
  0x3b   :  { %4440 = shalt.err (!%p4437_p12)
}
  0x3c   :  { %s4441_s11 = scalar_lea.vmem %s32_s2, 768  ;;  %p4446_p0 = scmp.lt.s32.totalorder %s32_s2, %s32_s2 }
  0x3d   :  { %p4442_p13 = scmp.ne.s32.totalorder %s32_s2, %s4441_s11  ;;  %p4447_p1 = scmp.lt.s32.totalorder %s4441_s11, %s4441_s11 }
  0x3f   :  { %p4448_p2 = por %p4447_p1, %p4446_p0 }
  0x41   :  { %p4449_p3 = pnand %p4448_p2, %p4442_p13 }
  0x43   :  { %4452 = shalt.err (!%p4449_p3)
}
  0x44   :  { %37 = dma.hbm_to_vmem [thread:$0]  %s5367_s1, 768, %s32_s2, [#allocation3], %s4530_s19, %s4530_s19, %s4531_s27  }
  0x45   :  { %s4453_s26 = scalar_lea.hbm %s5372_s6, 256 }
  0x46   :  { %p4454_p4 = scmp.ne.s32.totalorder %s5372_s6, %s4453_s26  ;;  %p4457_p5 = scmp.lt.u32.totalorder %s4453_s26, %s5372_s6 }
  0x48   :  { %p4459_p6 = pnand %p4457_p5, %p4454_p4 }
  0x4a   :  { %4462 = shalt.err (!%p4459_p6)
}
  0x4b   :  { %s4463_s21 = scalar_lea.vmem %s60_s29, 256  ;;  %p4468_p8 = scmp.lt.s32.totalorder %s60_s29, %s60_s29 }
  0x4c   :  { %p4464_p7 = scmp.ne.s32.totalorder %s60_s29, %s4463_s21  ;;  %p4469_p9 = scmp.lt.s32.totalorder %s4463_s21, %s4463_s21 }
  0x4e   :  { %p4470_p10 = por %p4469_p9, %p4468_p8 }
  0x50   :  { %p4471_p11 = pnand %p4470_p10, %p4464_p7 }
  0x52   :  { %4474 = shalt.err (!%p4471_p11)
}
  0x53   :  { %65 = dma.hbm_to_vmem [thread:$0]  %s5372_s6, 256, %s60_s29, [#allocation5], %s4530_s19, %s4530_s19, %s4531_s27  }
  0x54   :  { %s4534_s22 = smov [#allocation9]   ;;  %s4535_s24 = smov [#allocation12]  }
  0x55   :  { %s85_s23 = sshll.u32 %s4534_s22, 4  ;;  %s116_s11 = sshll.u32 %s4535_s24, 4  ;;  %s86_s23 = int_to_ptr.vmem [resolvable:$true] %s85_s23  ;;  %s117_s11 = int_to_ptr.vmem [resolvable:$true] %s116_s11 }
  0x56   :  { %s4475_s8 = scalar_lea.hbm %s5375_s9, 512 }
  0x57   :  { %p4476_p12 = scmp.ne.s32.totalorder %s5375_s9, %s4475_s8  ;;  %p4479_p13 = scmp.lt.u32.totalorder %s4475_s8, %s5375_s9 }
  0x59   :  { %p4481_p0 = pnand %p4479_p13, %p4476_p12 }
  0x5b   :  { %4484 = shalt.err (!%p4481_p0)
}
  0x5c   :  { %s4485_s6 = scalar_lea.vmem %s86_s23, 512  ;;  %p4490_p2 = scmp.lt.s32.totalorder %s86_s23, %s86_s23 }
  0x5d   :  { %p4486_p1 = scmp.ne.s32.totalorder %s86_s23, %s4485_s6  ;;  %p4491_p3 = scmp.lt.s32.totalorder %s4485_s6, %s4485_s6 }
  0x5f   :  { %p4492_p4 = por %p4491_p3, %p4490_p2 }
  0x61   :  { %p4493_p5 = pnand %p4492_p4, %p4486_p1 }
  0x63   :  { %4496 = shalt.err (!%p4493_p5)
}
  0x64   :  { %91 = dma.hbm_to_vmem [thread:$0]  %s5375_s9, 512, %s86_s23, [#allocation8], %s4530_s19, %s4530_s19, %s4531_s27  }
  0x65   :  { %s4497_s1 = scalar_lea.hbm %s5380_s14, 64 }
  0x66   :  { %p4498_p6 = scmp.ne.s32.totalorder %s5380_s14, %s4497_s1  ;;  %p4501_p7 = scmp.lt.u32.totalorder %s4497_s1, %s5380_s14 }
  0x68   :  { %p4503_p8 = pnand %p4501_p7, %p4498_p6 }
  0x6a   :  { %4506 = shalt.err (!%p4503_p8)
}
  0x6b   :  { %s4507_s25 = scalar_lea.vmem %s117_s11, 64  ;;  %p4512_p10 = scmp.lt.s32.totalorder %s117_s11, %s117_s11 }
  0x6c   :  { %p4508_p9 = scmp.ne.s32.totalorder %s117_s11, %s4507_s25  ;;  %p4513_p11 = scmp.lt.s32.totalorder %s4507_s25, %s4507_s25 }
  0x6e   :  { %p4514_p12 = por %p4513_p11, %p4512_p10 }
  0x70   :  { %p4515_p13 = pnand %p4514_p12, %p4508_p9 }
  0x72   :  { %4518 = shalt.err (!%p4515_p13)
}
  0x73   :  { %119 = dma.hbm_to_vmem [thread:$0]  %s5380_s14, 64, %s117_s11, [#allocation11]  }
  0x74   :  { %4519 = dma.done.wait [#allocation3], 768  }
  0x75   :  { %4520 = vsyncadd [#allocation3], 4294966528 }
  0x76   :  { %4521 = dma.done.wait [#allocation5], 384  }
  0x77   :  { %4522 = vsyncadd [#allocation5], 4294966912 }
  0x78   :  { %4523 = dma.done.wait [#allocation8], 1024  }
  0x79   :  { %4524 = vsyncadd [#allocation8], 4294966272 }
  0x7a   :  { %4525 = dma.done.wait [#allocation11], 576  }
  0x7b   :  { %4526 = vsyncadd [#allocation11], 4294966720  ;;  %vm179_vm0 = vcmask 1043456   ;;  %vm160_vm1 = vcmask 31744   ;;  %v153_v0 = vld [vmem:[%s5370_s4] sm:$0xf] }
  0x7c   :  { %v147_v1 = vld [vmem:[%s5366_s0] sm:$0xff]  ;;  %v148_v2 = vld [vmem:[%s5366_s0 + $0x8] sm:$0xff]  ;;  %3634 = vmatprep.subr.msk.mxu0 %vm179_vm0, %v153_v0  ;;  %v149_v3 = vld [vmem:[%s5366_s0 + $0x10] sm:$0xff]  ;;  %vm278_vm2 = vcmask 392192   ;;  %vm401_vm3 = vcmask 261120   ;;  %vm4537_vm4 = vmmov 0  }
  0x7d   :  { %3636 = vmatprep.mubr.msk.f32.mxu0 %vm160_vm1, %v147_v1  ;;  %3635 = vmatpush3.msk.msra.mxu0 %vm179_vm0, %v153_v0  ;;  %v150_v4 = vld [vmem:[%s5366_s0 + $0x18] sm:$0xff]  ;;  %v151_v5 = vld [vmem:[%s5366_s0 + $0x20] sm:$0xff]  ;;  %v152_v6 = vld [vmem:[%s5366_s0 + $0x28] sm:$0xff]  ;;  %s4539_s28 = smov 64   ;;  %s4540_s30 = smov 32   ;;  %vm3084_vm5 = vcmask 523264  }
  0x7e   :  { %3637 = vmatmul.mubr.msk.f32.vlgmr.msra.gmra.mrb[0].mxu0 %vm160_vm1, %v148_v2  ;;  %v4741_v7 = vld [vmem:[#allocation2] sm:$0xff]  ;;  %v3264_v9 = vld [vmem:[%s5371_s5 + $0x28] sm:$0xff]  ;;  %v3265_v10 = vld [vmem:[%s5371_s5 + $0x30] sm:$0xff]  ;;  %vm3240_vm6 = vcmask 41984  }
  0x7f   :  { %3639 = vmatprep.mubr.msk.f32.mxu0 %vm160_vm1, %v149_v3  ;;  %3657 = vmatprep.mubr.msk.f32.mxu1 %vm278_vm2, %v4741_v7  ;;  %v3263_v8 = vld [vmem:[%s5371_s5 + $0x20] sm:$0xff]  ;;  %v3266_v12 = vld [vmem:[%s5371_s5 + $0x38] sm:$0xff]  ;;  %v155_v14 = vld [vmem:[%s5369_s3 + $0x8] sm:$0xff] }
  0x80   :  { %v4053_v11 = vpack.c.bf16 %v3264_v9, %v3263_v8  ;;  %v4057_v13 = vpack.c.bf16 %v3266_v12, %v3265_v10  ;;  %v154_v15 = vld [vmem:[%s5369_s3] sm:$0xff]  ;;  %v157_v20 = vld [vmem:[%s5369_s3 + $0x18] sm:$0xff]  ;;  %v156_v21 = vld [vmem:[%s5369_s3 + $0x10] sm:$0xff] }
  0x81   :  { %v159_v27 = vld [vmem:[%s5369_s3 + $0x28] sm:$0xff]  ;;  %v158_v28 = vld [vmem:[%s5369_s3 + $0x20] sm:$0xff]  ;;  %v4795_v36 = vld [vmem:[#allocation2 + $0x10] sm:$0xff] }
  0x82   :  { %3640 = vmatmul.mubr.msk.f32.gmra.mrb[2].mxu0 %vm160_vm1, %v150_v4  ;;  %4054 = vmatprep.subr.bf16.mxu0 %v4053_v11  ;;  %v4793_v35 = vld [vmem:[#allocation2 + $0x8] sm:$0xff]  ;;  %v4801_v37 = vld [vmem:[#allocation2 + $0x18] sm:$0xff]  ;;  %v4803_v38 = vld [vmem:[#allocation2 + $0x20] sm:$0xff] }
  0x83   :  { %3642 = vmatprep.mubr.msk.f32.mxu0 %vm160_vm1, %v151_v5  ;;  %4056 = vmatpush3.bf16.msra.mxu0 %v4053_v11  ;;  %v4809_v39 = vld [vmem:[#allocation2 + $0x28] sm:$0xff]  ;;  %v392_v40 = vld [vmem:[%s5371_s5] sm:$0xff]  ;;  %v394_v43 = vld [vmem:[%s5371_s5 + $0x10] sm:$0xff] }
  0x84   :  { %4058 = vmatprep.subr.bf16.mxu0 %v4057_v13  ;;  %v393_v41 = vld [vmem:[%s5371_s5 + $0x8] sm:$0xff]  ;;  %v395_v44 = vld [vmem:[%s5371_s5 + $0x18] sm:$0xff]  ;;  %v3285_v49 = vld [vmem:[%s5371_s5 + $0x40] sm:$0xff] }
  0x85   :  { %v4061_v42 = vpack.c.bf16 %v393_v41, %v392_v40  ;;  %v4065_v47 = vpack.c.bf16 %v395_v44, %v394_v43  ;;  %v3286_v50 = vld [vmem:[%s5371_s5 + $0x48] sm:$0xff]  ;;  %v3287_v58 = vld [vmem:[%s5371_s5 + $0x50] sm:$0xff]  ;;  %v3288_v59 = vld [vmem:[%s5371_s5 + $0x58] sm:$0xff] }
  0x86   :  { %3643 = vmatmul.mubr.msk.f32.gmra.mrb[4].mxu0 %vm160_vm1, %v152_v6  ;;  %v4081_v53 = vpack.c.bf16 %v3286_v50, %v3285_v49  ;;  %v4085_v60 = vpack.c.bf16 %v3288_v59, %v3287_v58 }
  0x87   :  { %4060 = vmatpush3.bf16.msra.mxu0 %v4057_v13 }
  0x88   :  { %4062 = vmatprep.subr.bf16.mxu0 %v4061_v42 }
 0x151   :  { %v3638_v16 = vpop.f32.mrb[0].mxu0 }
 0x152   :  { %v4763_v17 = vadd.f32 %v3638_v16, %v155_v14  ;;  %v249_v18 = vpop.f32.mrb[1].mxu0  ;;  %v3295_v16 = vld [vmem:[#allocation6] ss:$0 sm:$0xff] }
 0x153   :  { %v4765_v19 = vadd.f32 %v249_v18, %v154_v15 }
 0x155   :  { %v3641_v22 = vpop.f32.mrb[2].mxu0  ;;  %v4041_v23 = vpack.c.bf16 %v4763_v17, %v4765_v19 }
 0x156   :  { %v4775_v24 = vadd.f32 %v3641_v22, %v157_v20  ;;  %v259_v25 = vpop.f32.mrb[3].mxu0 }
 0x157   :  { %v4777_v26 = vadd.f32 %v259_v25, %v156_v21  ;;  %4042 = vmatprep.subr.bf16.mxu1 %v4041_v23 }
 0x158   :  { %4044 = vmatpush3.bf16.msra.mxu1 %v4041_v23 }
 0x159   :  { %v3644_v29 = vpop.f32.mrb[4].mxu0  ;;  %v4045_v30 = vpack.c.bf16 %v4775_v24, %v4777_v26 }
 0x15a   :  { %v4787_v31 = vadd.f32 %v3644_v29, %v159_v27  ;;  %v269_v32 = vpop.f32.mrb[5].mxu0 }
 0x15b   :  { %v4789_v33 = vadd.f32 %v269_v32, %v158_v28  ;;  %4046 = vmatprep.subr.bf16.mxu1 %v4045_v30 }
 0x15c   :  { %4048 = vmatpush3.bf16.msra.mxu1 %v4045_v30 }
 0x15d   :  { %v4049_v34 = vpack.c.bf16 %v4787_v31, %v4789_v33 }
 0x15f   :  { %4050 = vmatprep.subr.bf16.mxu1 %v4049_v34 }
 0x160   :  { %4052 = vmatpush3.bf16.msra.mxu1 %v4049_v34 }
 0x163   :  { %3658 = vmatmul.mubr.msk.f32.vlgmr.msra.gmra.mrb[0].mxu1 %vm278_vm2, %v4793_v35 }
 0x164   :  { %3660 = vmatprep.mubr.msk.f32.mxu1 %vm278_vm2, %v4795_v36 }
 0x167   :  { %3661 = vmatmul.mubr.msk.f32.gmra.mrb[2].mxu1 %vm278_vm2, %v4801_v37 }
 0x168   :  { %3663 = vmatprep.mubr.msk.f32.mxu1 %vm278_vm2, %v4803_v38 }
 0x16b   :  { %3664 = vmatmul.mubr.msk.f32.gmra.mrb[4].mxu1 %vm278_vm2, %v4809_v39 }
 0x16c   :  { %3712 = vmatprep.mubr.msk.f32.mxu1 %vm278_vm2, %v4741_v7 }
 0x236   :  { %v3659_v45 = vpop.f32.mrb[0].mxu1 }
 0x237   :  { %v363_v46 = vpop.f32.mrb[1].mxu1 }
 0x238   :  { %v4069_v48 = vpack.c.bf16 %v3659_v45, %v363_v46  ;;  %3674 = vmatprep.mubr.msk.f32.mxu0 %vm401_vm3, %v363_v46 }
 0x239   :  { %3675 = vmatmul.mubr.msk.f32.vlgmr.msra.gmra.mrb[6].mxu0 %vm401_vm3, %v3659_v45 }
 0x23a   :  { %v3662_v51 = vpop.f32.mrb[2].mxu1  ;;  %4070 = vmatprep.subr.bf16.mxu1 %v4069_v48  ;;  %4064 = vmatpush3.bf16.msra.mxu0 %v4061_v42 }
 0x23b   :  { %v373_v52 = vpop.f32.mrb[3].mxu1  ;;  %4072 = vmatpush3.bf16.msra.mxu1 %v4069_v48  ;;  %4066 = vmatprep.subr.bf16.mxu0 %v4065_v47 }
 0x23c   :  { %v4073_v54 = vpack.c.bf16 %v3662_v51, %v373_v52  ;;  %3677 = vmatprep.mubr.msk.f32.mxu0 %vm401_vm3, %v373_v52 }
 0x23d   :  { %3678 = vmatmul.mubr.msk.f32.gmra.mrb[8].mxu0 %vm401_vm3, %v3662_v51 }
 0x23e   :  { %v3665_v55 = vpop.f32.mrb[4].mxu1  ;;  %4074 = vmatprep.subr.bf16.mxu1 %v4073_v54  ;;  %4068 = vmatpush3.bf16.msra.mxu0 %v4065_v47 }
 0x23f   :  { %v383_v56 = vpop.f32.mrb[5].mxu1  ;;  %4076 = vmatpush3.bf16.msra.mxu1 %v4073_v54  ;;  %4082 = vmatprep.subr.bf16.mxu0 %v4081_v53 }
 0x240   :  { %v4077_v57 = vpack.c.bf16 %v3665_v55, %v383_v56  ;;  %3680 = vmatprep.mubr.msk.f32.mxu0 %vm401_vm3, %v383_v56 }
 0x241   :  { %3681 = vmatmul.mubr.msk.f32.gmra.mrb[10].mxu0 %vm401_vm3, %v3665_v55 }
 0x242   :  { %3691 = vmatprep.mubr.msk.f32.mxu0 %vm401_vm3, %v4765_v19  ;;  %4078 = vmatprep.subr.bf16.mxu1 %v4077_v57 }
 0x243   :  { %4080 = vmatpush3.bf16.msra.mxu1 %v4077_v57 }
 0x245   :  { %3692 = vmatmul.mubr.msk.f32.vlgmr.msra.gmra.mrb[6].mxu0 %vm401_vm3, %v4763_v17 }
 0x246   :  { %3694 = vmatprep.mubr.msk.f32.mxu0 %vm401_vm3, %v4777_v26  ;;  %3713 = vmatmul.mubr.msk.f32.vlgmr.msra.gmra.mrb[6].mxu1 %vm278_vm2, %v4793_v35 }
 0x247   :  { %3715 = vmatprep.mubr.msk.f32.mxu1 %vm278_vm2, %v4795_v36  ;;  %4084 = vmatpush3.bf16.msra.mxu0 %v4081_v53 }
 0x248   :  { %4086 = vmatprep.subr.bf16.mxu0 %v4085_v60 }
 0x249   :  { %3695 = vmatmul.mubr.msk.f32.gmra.mrb[8].mxu0 %vm401_vm3, %v4775_v24 }
 0x24a   :  { %3697 = vmatprep.mubr.msk.f32.mxu0 %vm401_vm3, %v4789_v33  ;;  %3716 = vmatmul.mubr.msk.f32.gmra.mrb[8].mxu1 %vm278_vm2, %v4801_v37 }
 0x24b   :  { %3718 = vmatprep.mubr.msk.f32.mxu1 %vm278_vm2, %v4803_v38  ;;  %4088 = vmatpush3.bf16.msra.mxu0 %v4085_v60 }
 0x24d   :  { %3698 = vmatmul.mubr.msk.f32.gmra.mrb[10].mxu0 %vm401_vm3, %v4787_v31 }
 0x24e   :  { %3719 = vmatmul.mubr.msk.f32.gmra.mrb[10].mxu1 %vm278_vm2, %v4809_v39 }
 0x24f   :  { %3750 = vmatprep.mubr.msk.f32.mxu1 %vm278_vm2, %v4741_v7 }
 0x319   :  { %v3714_v61 = vpop.f32.mrb[6].mxu1 }
 0x31a   :  { %v724_v62 = vmul.f32 2.0, %v3714_v61  ;;  %v694_v63 = vpop.f32.mrb[7].mxu1 }
 0x31b   :  { %v723_v0 = vmul.f32 2.0, %v694_v63 }
 0x31c   :  { %v730_v3 = vsub.f32 %v724_v62, %v4763_v17 }
 0x31d   :  { %v729_v1 = vsub.f32 %v723_v0, %v4765_v19  ;;  %v3717_v2 = vpop.f32.mrb[8].mxu1 }
 0x31e   :  { %v726_v4 = vmul.f32 2.0, %v3717_v2  ;;  %v704_v5 = vpop.f32.mrb[9].mxu1 }
 0x31f   :  { %v725_v6 = vmul.f32 2.0, %v704_v5  ;;  %3729 = vmatprep.mubr.msk.f32.mxu0 %vm401_vm3, %v729_v1 }
 0x320   :  { %3730 = vmatmul.mubr.msk.f32.vlgmr.msra.gmra.mrb[6].mxu0 %vm401_vm3, %v730_v3  ;;  %v732_v10 = vsub.f32 %v726_v4, %v4775_v24 }
 0x321   :  { %v731_v8 = vsub.f32 %v725_v6, %v4777_v26  ;;  %v3720_v9 = vpop.f32.mrb[10].mxu1 }
 0x322   :  { %v728_v11 = vmul.f32 2.0, %v3720_v9  ;;  %v714_v12 = vpop.f32.mrb[11].mxu1 }
 0x323   :  { %v727_v13 = vmul.f32 2.0, %v714_v12  ;;  %3732 = vmatprep.mubr.msk.f32.mxu0 %vm401_vm3, %v731_v8 }
 0x324   :  { %3733 = vmatmul.mubr.msk.f32.gmra.mrb[8].mxu0 %vm401_vm3, %v732_v10  ;;  %v734_v15 = vsub.f32 %v728_v11, %v4787_v31 }
 0x325   :  { %v733_v14 = vsub.f32 %v727_v13, %v4789_v33 }
 0x327   :  { %3735 = vmatprep.mubr.msk.f32.mxu0 %vm401_vm3, %v733_v14 }
 0x328   :  { %3736 = vmatmul.mubr.msk.f32.gmra.mrb[10].mxu0 %vm401_vm3, %v734_v15 }
 0x329   :  { %3805 = vmatprep.mubr.msk.f32.mxu0 %vm278_vm2, %v4741_v7 }
 0x3f3   :  { %v3731_v18 = vpop.f32.mrb[6].mxu0 }
 0x3f4   :  { %v865_v20 = vadd.f32 %v3731_v18, %v3295_v16  ;;  %v824_v21 = vpop.f32.mrb[7].mxu0 }
 0x3f5   :  { %v864_v22 = vadd.f32 %v3295_v16, %v824_v21 }
 0x3f6   :  { %v871_v23 = vmax.f32 %v865_v20, 0.0 }
 0x3f7   :  { %v870_v25 = vmax.f32 %v864_v22, 0.0  ;;  %v3734_v27 = vpop.f32.mrb[8].mxu0 }
 0x3f8   :  { %v4884_v28 = vadd.f32 %v871_v23, %v4763_v17  ;;  %v867_v29 = vadd.f32 %v3734_v27, %v3295_v16  ;;  %v834_v30 = vpop.f32.mrb[9].mxu0 }
 0x3f9   :  { %v4887_v32 = vadd.f32 %v870_v25, %v4765_v19  ;;  %v866_v34 = vadd.f32 %v3295_v16, %v834_v30 }
 0x3fa   :  { %v885_v40 = vsel %vm401_vm3, %v4884_v28, 0.0  ;;  %v908_v41 = vmul.f32 %v4884_v28, %v4884_v28  ;;  %v873_v44 = vmax.f32 %v867_v29, 0.0 }
 0x3fb   :  { %v872_v42 = vmax.f32 %v866_v34, 0.0  ;;  %886 = vadd.xlane.f32.xlu0 %v885_v40  ;;  %v3737_v43 = vpop.f32.mrb[10].mxu0  ;;  %v907_v46 = vmul.f32 %v4887_v32, %v4887_v32  ;;  %v882_v48 = vsel %vm401_vm3, %v4887_v32, 0.0  ;;  %v3296_v40 = vld [vmem:[#allocation6 + $0x3] ss:$0 sm:$0xff] }
 0x3fc   :  { %v844_v45 = vpop.f32.mrb[11].mxu0  ;;  %v916_v17 = vsel %vm401_vm3, %v908_v41, 0.0  ;;  %v4902_v49 = vadd.f32 %v873_v44, %v4775_v24  ;;  %v869_v50 = vadd.f32 %v3737_v43, %v3295_v16 }
 0x3fd   :  { %917 = vadd.xlane.f32.xlu1 %v916_v17  ;;  %v4897_v19 = vadd.f32 %v872_v42, %v4777_v26  ;;  %v868_v47 = vadd.f32 %v3295_v16, %v844_v45  ;;  %v913_v51 = vsel %vm401_vm3, %v907_v46, 0.0 }
 0x3fe   :  { %v875_v54 = vmax.f32 %v869_v50, 0.0  ;;  %v891_v55 = vsel %vm401_vm3, %v4902_v49, 0.0  ;;  %v910_v24 = vmul.f32 %v4902_v49, %v4902_v49 }
 0x3ff   :  { %883 = vadd.xlane.f32.xlu0 %v882_v48  ;;  %v874_v52 = vmax.f32 %v868_v47, 0.0  ;;  %v888_v53 = vsel %vm401_vm3, %v4897_v19, 0.0  ;;  %v909_v26 = vmul.f32 %v4897_v19, %v4897_v19 }
 0x400   :  { %v4918_v58 = vadd.f32 %v875_v54, %v4787_v31  ;;  %v922_v59 = vsel %vm401_vm3, %v910_v24, 0.0 }
 0x401   :  { %914 = vadd.xlane.f32.xlu1 %v913_v51  ;;  %v4914_v56 = vadd.f32 %v874_v52, %v4789_v33  ;;  %v919_v57 = vsel %vm401_vm3, %v909_v26, 0.0 }
 0x402   :  { %v897_v33 = vsel %vm401_vm3, %v4918_v58, 0.0  ;;  %v912_v62 = vmul.f32 %v4918_v58, %v4918_v58 }
 0x403   :  { %889 = vadd.xlane.f32.xlu0 %v888_v53  ;;  %v894_v60 = vsel %vm401_vm3, %v4914_v56, 0.0  ;;  %v911_v61 = vmul.f32 %v4914_v56, %v4914_v56 }
 0x404   :  { %v928_v63 = vsel %vm401_vm3, %v912_v62, 0.0  ;;  %v3297_v62 = vld [vmem:[#allocation6 + $0x6] ss:$0 sm:$0xff] }
 0x405   :  { %892 = vadd.xlane.f32.xlu1 %v891_v55  ;;  %v925_v31 = vsel %vm401_vm3, %v911_v61, 0.0 }
 0x407   :  { %920 = vadd.xlane.f32.xlu0 %v919_v57 }
 0x409   :  { %923 = vadd.xlane.f32.xlu1 %v922_v59 }
 0x40b   :  { %895 = vadd.xlane.f32.xlu0 %v894_v60 }
 0x40d   :  { %898 = vadd.xlane.f32.xlu1 %v897_v33 }
 0x40f   :  { %926 = vadd.xlane.f32.xlu0 %v925_v31 }
 0x411   :  { %929 = vadd.xlane.f32.xlu1 %v928_v63 }
 0x488   :  { %v887_v0 = vpop.xlane.xlu0 %886 }
 0x489   :  { %v902_v1 = vmul.f32 0.03125, %v887_v0 }
 0x48a   :  { %v918_v2 = vpop.xlane.xlu1 %917 }
 0x48b   :  { %v938_v3 = vmul.f32 %v902_v1, %v902_v1  ;;  %v932_v4 = vmul.f32 0.03125, %v918_v2  ;;  %v973_v52 = vsub.f32 %v4884_v28, %v902_v1 }
 0x48c   :  { %v884_v5 = vpop.xlane.xlu0 %883 }
 0x48d   :  { %v944_v6 = vsub.f32 %v932_v4, %v938_v3  ;;  %v901_v8 = vmul.f32 0.03125, %v884_v5 }
 0x48e   :  { %v915_v9 = vpop.xlane.xlu1 %914 }
 0x48f   :  { %v950_v10 = vadd.f32 1e-05, %v944_v6  ;;  %v937_v11 = vmul.f32 %v901_v8, %v901_v8  ;;  %v931_v12 = vmul.f32 0.03125, %v915_v9  ;;  %v972_v57 = vsub.f32 %v4887_v32, %v901_v8 }
 0x490   :  { %v890_v13 = vpop.xlane.xlu0 %889 }
 0x491   :  { %4300 = vrsqrt.f32 %v950_v10  ;;  %v943_v14 = vsub.f32 %v931_v12, %v937_v11  ;;  %v903_v15 = vmul.f32 0.03125, %v890_v13 }
 0x492   :  { %v893_v16 = vpop.xlane.xlu1 %892 }
 0x493   :  { %v949_v18 = vadd.f32 1e-05, %v943_v14  ;;  %v904_v20 = vmul.f32 0.03125, %v893_v16  ;;  %v939_v22 = vmul.f32 %v903_v15, %v903_v15  ;;  %v974_v1 = vsub.f32 %v4897_v19, %v903_v15 }
 0x494   :  { %v921_v21 = vpop.xlane.xlu0 %920 }
 0x495   :  { %4302 = vrsqrt.f32 %v949_v18  ;;  %v933_v23 = vmul.f32 0.03125, %v921_v21  ;;  %v940_v27 = vmul.f32 %v904_v20, %v904_v20  ;;  %v975_v5 = vsub.f32 %v4902_v49, %v904_v20  ;;  %v3308_v21 = vld [vmem:[%s5371_s5 + $0x80] sm:$0xff] }
 0x496   :  { %v924_v25 = vpop.xlane.xlu1 %923 }
 0x497   :  { %v945_v29 = vsub.f32 %v933_v23, %v939_v22  ;;  %v934_v30 = vmul.f32 0.03125, %v924_v25 }
 0x498   :  { %v896_v34 = vpop.xlane.xlu0 %895 }
 0x499   :  { %v951_v41 = vadd.f32 1e-05, %v945_v29  ;;  %v946_v42 = vsub.f32 %v934_v30, %v940_v27  ;;  %v905_v43 = vmul.f32 0.03125, %v896_v34  ;;  %v3310_v27 = vld [vmem:[%s5371_s5 + $0x90] sm:$0xff]  ;;  %v3311_v29 = vld [vmem:[%s5371_s5 + $0x98] sm:$0xff]  ;;  %v3304_v34 = vld [vmem:[%s5371_s5 + $0x60] sm:$0xff] }
 0x49a   :  { %v899_v44 = vpop.xlane.xlu1 %898  ;;  %v4105_v30 = vpack.c.bf16 %v3311_v29, %v3310_v27 }
 0x49b   :  { %v4301_v45 = vpop.eup %4300  ;;  %4304 = vrsqrt.f32 %v951_v41  ;;  %v952_v17 = vadd.f32 1e-05, %v946_v42  ;;  %v906_v47 = vmul.f32 0.03125, %v899_v44  ;;  %v941_v50 = vmul.f32 %v905_v43, %v905_v43  ;;  %v3306_v42 = vld [vmem:[%s5371_s5 + $0x70] sm:$0xff] }
 0x49c   :  { %v967_v46 = vmul.f32 %v4301_v45, %v3296_v40  ;;  %v927_v48 = vpop.xlane.xlu0 %926  ;;  %v976_v13 = vsub.f32 %v4914_v56, %v905_v43  ;;  %v3309_v56 = vld [vmem:[%s5371_s5 + $0x88] sm:$0xff]  ;;  %v3307_v43 = vld [vmem:[%s5371_s5 + $0x78] sm:$0xff] }
 0x49d   :  { %4306 = vrsqrt.f32 %v952_v17  ;;  %v935_v51 = vmul.f32 0.03125, %v927_v48  ;;  %v942_v54 = vmul.f32 %v906_v47, %v906_v47  ;;  %v977_v16 = vsub.f32 %v4918_v58, %v906_v47  ;;  %v3330_v47 = vld [vmem:[%s5371_s5 + $0xa0] sm:$0xff]  ;;  %v3331_v48 = vld [vmem:[%s5371_s5 + $0xa8] sm:$0xff] }
 0x49e   :  { %v930_v53 = vpop.xlane.xlu1 %929  ;;  %v979_v60 = vmul.f32 %v973_v52, %v967_v46  ;;  %v4101_v25 = vpack.c.bf16 %v3309_v56, %v3308_v21  ;;  %v4113_v17 = vpack.c.bf16 %v3307_v43, %v3306_v42  ;;  %v4129_v52 = vpack.c.bf16 %v3331_v48, %v3330_v47 }
 0x49f   :  { %v4303_v26 = vpop.eup %4302  ;;  %v947_v55 = vsub.f32 %v935_v51, %v941_v50  ;;  %v936_v24 = vmul.f32 0.03125, %v930_v53 }
 0x4a0   :  { %v966_v59 = vmul.f32 %v4303_v26, %v3296_v40  ;;  %v4935_v2 = vadd.f32 %v3297_v62, %v979_v60 }
 0x4a1   :  { %v953_v61 = vadd.f32 1e-05, %v947_v55  ;;  %v948_v33 = vsub.f32 %v936_v24, %v942_v54  ;;  %v3332_v24 = vld [vmem:[%s5371_s5 + $0xb0] sm:$0xff] }
 0x4a2   :  { %v978_v31 = vmul.f32 %v972_v57, %v966_v59  ;;  %v3333_v57 = vld [vmem:[%s5371_s5 + $0xb8] sm:$0xff] }
 0x4a3   :  { %4308 = vrsqrt.f32 %v953_v61  ;;  %v954_v63 = vadd.f32 1e-05, %v948_v33  ;;  %v4133_v59 = vpack.c.bf16 %v3333_v57, %v3332_v24 }
 0x4a4   :  { %v4933_v0 = vadd.f32 %v3297_v62, %v978_v31 }
 0x4a5   :  { %v4305_v28 = vpop.eup %4304  ;;  %4310 = vrsqrt.f32 %v954_v63 }
 0x4a6   :  { %v968_v3 = vmul.f32 %v4305_v28, %v3296_v40  ;;  %v4089_v32 = vpack.c.bf16 %v4935_v2, %v4933_v0 }
 0x4a7   :  { %v4307_v4 = vpop.eup %4306 }
 0x4a8   :  { %v969_v6 = vmul.f32 %v4307_v4, %v3296_v40  ;;  %4090 = vmatprep.subr.bf16.mxu1 %v4089_v32  ;;  %v980_v8 = vmul.f32 %v974_v1, %v968_v3 }
 0x4a9   :  { %4092 = vmatpush3.bf16.msra.mxu1 %v4089_v32 }
 0x4aa   :  { %v981_v9 = vmul.f32 %v975_v5, %v969_v6  ;;  %v4941_v10 = vadd.f32 %v3297_v62, %v980_v8 }
 0x4ac   :  { %v4943_v11 = vadd.f32 %v3297_v62, %v981_v9 }
 0x4ad   :  { %v4309_v12 = vpop.eup %4308 }
 0x4ae   :  { %v970_v19 = vmul.f32 %v4309_v12, %v3296_v40  ;;  %v4093_v14 = vpack.c.bf16 %v4943_v11, %v4941_v10 }
 0x4af   :  { %v4311_v15 = vpop.eup %4310 }
 0x4b0   :  { %v971_v49 = vmul.f32 %v4311_v15, %v3296_v40  ;;  %4094 = vmatprep.subr.bf16.mxu1 %v4093_v14  ;;  %v982_v18 = vmul.f32 %v976_v13, %v970_v19  ;;  %v3305_v40 = vld [vmem:[%s5371_s5 + $0x68] sm:$0xff] }
 0x4b1   :  { %4096 = vmatpush3.bf16.msra.mxu1 %v4093_v14  ;;  %v4109_v41 = vpack.c.bf16 %v3305_v40, %v3304_v34  ;;  %v3340_v14 = vld [vmem:[#allocation6 + $0x1] ss:$0 sm:$0xff] }
 0x4b2   :  { %v983_v20 = vmul.f32 %v977_v16, %v971_v49  ;;  %v4955_v22 = vadd.f32 %v3297_v62, %v982_v18 }
 0x4b4   :  { %v4957_v23 = vadd.f32 %v3297_v62, %v983_v20 }
 0x4b6   :  { %v4097_v58 = vpack.c.bf16 %v4957_v23, %v4955_v22 }
 0x4b8   :  { %4098 = vmatprep.subr.bf16.mxu1 %v4097_v58 }
 0x4b9   :  { %4100 = vmatpush3.bf16.msra.mxu1 %v4097_v58 }
 0x4ba   :  { %4102 = vmatprep.subr.bf16.mxu1 %v4101_v25 }
 0x4bc   :  { %3751 = vmatmul.mubr.msk.f32.vlgmr.msra.gmra.mrb[12].mxu1 %vm278_vm2, %v4793_v35 }
 0x4bd   :  { %3753 = vmatprep.mubr.msk.f32.mxu1 %vm278_vm2, %v4795_v36  ;;  %4104 = vmatpush3.bf16.msra.mxu1 %v4101_v25 }
 0x4be   :  { %4106 = vmatprep.subr.bf16.mxu1 %v4105_v30 }
 0x4c0   :  { %3754 = vmatmul.mubr.msk.f32.gmra.mrb[14].mxu1 %vm278_vm2, %v4801_v37 }
 0x4c1   :  { %3756 = vmatprep.mubr.msk.f32.mxu1 %vm278_vm2, %v4803_v38  ;;  %4108 = vmatpush3.bf16.msra.mxu1 %v4105_v30 }
 0x4c2   :  { %4110 = vmatprep.subr.bf16.mxu1 %v4109_v41 }
 0x4c4   :  { %3757 = vmatmul.mubr.msk.f32.gmra.mrb[16].mxu1 %vm278_vm2, %v4809_v39 }
 0x58f   :  { %v3752_v44 = vpop.f32.mrb[12].mxu1 }
 0x590   :  { %v1061_v45 = vpop.f32.mrb[13].mxu1 }
 0x591   :  { %v4117_v46 = vpack.c.bf16 %v3752_v44, %v1061_v45  ;;  %3767 = vmatprep.mubr.msk.f32.mxu1 %vm401_vm3, %v1061_v45 }
 0x592   :  { %3768 = vmatmul.mubr.msk.f32.vlgmr.msra.gmra.mrb[18].mxu1 %vm401_vm3, %v3752_v44 }
 0x593   :  { %v3755_v50 = vpop.f32.mrb[14].mxu1  ;;  %4118 = vmatprep.subr.bf16.mxu0 %v4117_v46  ;;  %4112 = vmatpush3.bf16.msra.mxu1 %v4109_v41 }
 0x594   :  { %v1071_v51 = vpop.f32.mrb[15].mxu1  ;;  %4120 = vmatpush3.bf16.msra.mxu0 %v4117_v46  ;;  %4114 = vmatprep.subr.bf16.mxu1 %v4113_v17 }
 0x595   :  { %v4121_v53 = vpack.c.bf16 %v3755_v50, %v1071_v51  ;;  %3770 = vmatprep.mubr.msk.f32.mxu1 %vm401_vm3, %v1071_v51 }
 0x596   :  { %3771 = vmatmul.mubr.msk.f32.gmra.mrb[20].mxu1 %vm401_vm3, %v3755_v50 }
 0x597   :  { %v3758_v26 = vpop.f32.mrb[16].mxu1  ;;  %4122 = vmatprep.subr.bf16.mxu0 %v4121_v53  ;;  %4116 = vmatpush3.bf16.msra.mxu1 %v4113_v17 }
 0x598   :  { %v1081_v54 = vpop.f32.mrb[17].mxu1  ;;  %4124 = vmatpush3.bf16.msra.mxu0 %v4121_v53  ;;  %4130 = vmatprep.subr.bf16.mxu1 %v4129_v52 }
 0x599   :  { %v4125_v55 = vpack.c.bf16 %v3758_v26, %v1081_v54  ;;  %3773 = vmatprep.mubr.msk.f32.mxu1 %vm401_vm3, %v1081_v54 }
 0x59a   :  { %3774 = vmatmul.mubr.msk.f32.gmra.mrb[22].mxu1 %vm401_vm3, %v3758_v26 }
 0x59b   :  { %3784 = vmatprep.mubr.msk.f32.mxu1 %vm401_vm3, %v4933_v0  ;;  %4126 = vmatprep.subr.bf16.mxu0 %v4125_v55 }
 0x59c   :  { %4128 = vmatpush3.bf16.msra.mxu0 %v4125_v55 }
 0x59e   :  { %3785 = vmatmul.mubr.msk.f32.vlgmr.msra.gmra.mrb[18].mxu1 %vm401_vm3, %v4935_v2 }
 0x59f   :  { %3787 = vmatprep.mubr.msk.f32.mxu1 %vm401_vm3, %v4941_v10  ;;  %3806 = vmatmul.mubr.msk.f32.vlgmr.msra.gmra.mrb[12].mxu0 %vm278_vm2, %v4793_v35 }
 0x5a0   :  { %3808 = vmatprep.mubr.msk.f32.mxu0 %vm278_vm2, %v4795_v36  ;;  %4132 = vmatpush3.bf16.msra.mxu1 %v4129_v52 }
 0x5a1   :  { %4134 = vmatprep.subr.bf16.mxu1 %v4133_v59 }
 0x5a2   :  { %3788 = vmatmul.mubr.msk.f32.gmra.mrb[20].mxu1 %vm401_vm3, %v4943_v11 }
 0x5a3   :  { %3790 = vmatprep.mubr.msk.f32.mxu1 %vm401_vm3, %v4955_v22  ;;  %3809 = vmatmul.mubr.msk.f32.gmra.mrb[14].mxu0 %vm278_vm2, %v4801_v37 }
 0x5a4   :  { %3811 = vmatprep.mubr.msk.f32.mxu0 %vm278_vm2, %v4803_v38  ;;  %4136 = vmatpush3.bf16.msra.mxu1 %v4133_v59 }
 0x5a6   :  { %3791 = vmatmul.mubr.msk.f32.gmra.mrb[22].mxu1 %vm401_vm3, %v4957_v23 }
 0x5a7   :  { %3812 = vmatmul.mubr.msk.f32.gmra.mrb[16].mxu0 %vm278_vm2, %v4809_v39 }
 0x5a8   :  { %3843 = vmatprep.mubr.msk.f32.mxu0 %vm278_vm2, %v4741_v7 }
 0x672   :  { %v3807_v60 = vpop.f32.mrb[12].mxu0 }
 0x673   :  { %v1422_v61 = vmul.f32 2.0, %v3807_v60  ;;  %v1392_v33 = vpop.f32.mrb[13].mxu0 }
 0x674   :  { %v1421_v62 = vmul.f32 2.0, %v1392_v33 }
 0x675   :  { %v1428_v28 = vsub.f32 %v1422_v61, %v4935_v2 }
 0x676   :  { %v1427_v31 = vsub.f32 %v1421_v62, %v4933_v0  ;;  %v3810_v63 = vpop.f32.mrb[14].mxu0 }
 0x677   :  { %v1424_v1 = vmul.f32 2.0, %v3810_v63  ;;  %v1402_v3 = vpop.f32.mrb[15].mxu0 }
 0x678   :  { %v1423_v32 = vmul.f32 2.0, %v1402_v3  ;;  %3822 = vmatprep.mubr.msk.f32.mxu1 %vm401_vm3, %v1427_v31 }
 0x679   :  { %3823 = vmatmul.mubr.msk.f32.vlgmr.msra.gmra.mrb[18].mxu1 %vm401_vm3, %v1428_v28  ;;  %v1430_v6 = vsub.f32 %v1424_v1, %v4943_v11 }
 0x67a   :  { %v1429_v4 = vsub.f32 %v1423_v32, %v4941_v10  ;;  %v3813_v5 = vpop.f32.mrb[16].mxu0 }
 0x67b   :  { %v1426_v8 = vmul.f32 2.0, %v3813_v5  ;;  %v1412_v9 = vpop.f32.mrb[17].mxu0 }
 0x67c   :  { %v1425_v12 = vmul.f32 2.0, %v1412_v9  ;;  %3825 = vmatprep.mubr.msk.f32.mxu1 %vm401_vm3, %v1429_v4 }
 0x67d   :  { %3826 = vmatmul.mubr.msk.f32.gmra.mrb[20].mxu1 %vm401_vm3, %v1430_v6  ;;  %v1432_v19 = vsub.f32 %v1426_v8, %v4957_v23 }
 0x67e   :  { %v1431_v13 = vsub.f32 %v1425_v12, %v4955_v22 }
 0x680   :  { %3828 = vmatprep.mubr.msk.f32.mxu1 %vm401_vm3, %v1431_v13 }
 0x681   :  { %3829 = vmatmul.mubr.msk.f32.gmra.mrb[22].mxu1 %vm401_vm3, %v1432_v19 }
 0x682   :  { %3898 = vmatprep.mubr.msk.f32.mxu1 %vm278_vm2, %v4741_v7 }
 0x74c   :  { %v3824_v15 = vpop.f32.mrb[18].mxu1 }
 0x74d   :  { %v1563_v16 = vadd.f32 %v3824_v15, %v3340_v14  ;;  %v1522_v49 = vpop.f32.mrb[19].mxu1 }
 0x74e   :  { %v1562_v18 = vadd.f32 %v3340_v14, %v1522_v49 }
 0x74f   :  { %v1569_v20 = vmax.f32 %v1563_v16, 0.0 }
 0x750   :  { %v1568_v21 = vmax.f32 %v1562_v18, 0.0  ;;  %v3827_v56 = vpop.f32.mrb[20].mxu1 }
 0x751   :  { %v5046_v58 = vadd.f32 %v1569_v20, %v4935_v2  ;;  %v1565_v25 = vadd.f32 %v3827_v56, %v3340_v14  ;;  %v1532_v27 = vpop.f32.mrb[21].mxu1 }
 0x752   :  { %v5049_v29 = vadd.f32 %v1568_v21, %v4933_v0  ;;  %v1564_v30 = vadd.f32 %v3340_v14, %v1532_v27 }
 0x753   :  { %v1571_v34 = vmax.f32 %v1565_v25, 0.0  ;;  %v1583_v7 = vsel %vm401_vm3, %v5046_v58, 0.0  ;;  %v1605_v40 = vmul.f32 %v5046_v58, %v5046_v58 }
 0x754   :  { %v1570_v41 = vmax.f32 %v1564_v30, 0.0  ;;  %1584 = vadd.xlane.f32.xlu1 %v1583_v7  ;;  %v3830_v42 = vpop.f32.mrb[22].mxu1  ;;  %v1580_v2 = vsel %vm401_vm3, %v5049_v29, 0.0  ;;  %v1604_v43 = vmul.f32 %v5049_v29, %v5049_v29 }
 0x755   :  { %1581 = vadd.xlane.f32.xlu0 %v1580_v2  ;;  %v1542_v0 = vpop.f32.mrb[23].mxu1  ;;  %v5060_v44 = vadd.f32 %v1571_v34, %v4943_v11  ;;  %v1567_v45 = vadd.f32 %v3830_v42, %v3340_v14  ;;  %v1613_v17 = vsel %vm401_vm3, %v1605_v40, 0.0  ;;  %v3341_v2 = vld [vmem:[#allocation6 + $0x4] ss:$0 sm:$0xff] }
 0x756   :  { %v5064_v46 = vadd.f32 %v1570_v41, %v4941_v10  ;;  %v1566_v47 = vadd.f32 %v3340_v14, %v1542_v0  ;;  %v1610_v48 = vsel %vm401_vm3, %v1604_v43, 0.0 }
 0x757   :  { %v1573_v50 = vmax.f32 %v1567_v45, 0.0  ;;  %v1589_v51 = vsel %vm401_vm3, %v5060_v44, 0.0  ;;  %v1607_v52 = vmul.f32 %v5060_v44, %v5060_v44 }
 0x758   :  { %1614 = vadd.xlane.f32.xlu1 %v1613_v17  ;;  %v1572_v11 = vmax.f32 %v1566_v47, 0.0  ;;  %v1586_v53 = vsel %vm401_vm3, %v5064_v46, 0.0  ;;  %v1606_v10 = vmul.f32 %v5064_v46, %v5064_v46 }
 0x759   :  { %1611 = vadd.xlane.f32.xlu0 %v1610_v48  ;;  %v5076_v26 = vadd.f32 %v1573_v50, %v4957_v23  ;;  %v1619_v54 = vsel %vm401_vm3, %v1607_v52, 0.0 }
 0x75a   :  { %v5080_v55 = vadd.f32 %v1572_v11, %v4955_v22  ;;  %v1616_v24 = vsel %vm401_vm3, %v1606_v10, 0.0 }
 0x75b   :  { %v1595_v57 = vsel %vm401_vm3, %v5076_v26, 0.0  ;;  %v1609_v59 = vmul.f32 %v5076_v26, %v5076_v26 }
 0x75c   :  { %1590 = vadd.xlane.f32.xlu1 %v1589_v51  ;;  %v1592_v23 = vsel %vm401_vm3, %v5080_v55, 0.0  ;;  %v1608_v60 = vmul.f32 %v5080_v55, %v5080_v55 }
 0x75d   :  { %1587 = vadd.xlane.f32.xlu0 %v1586_v53  ;;  %v1625_v22 = vsel %vm401_vm3, %v1609_v59, 0.0 }
 0x75e   :  { %v1622_v61 = vsel %vm401_vm3, %v1608_v60, 0.0 }
 0x760   :  { %1620 = vadd.xlane.f32.xlu1 %v1619_v54 }
 0x761   :  { %1617 = vadd.xlane.f32.xlu0 %v1616_v24  ;;  %v3342_v24 = vld [vmem:[#allocation6 + $0x7] ss:$0 sm:$0xff] }
 0x764   :  { %1596 = vadd.xlane.f32.xlu1 %v1595_v57 }
 0x765   :  { %1593 = vadd.xlane.f32.xlu0 %v1592_v23 }
 0x768   :  { %1626 = vadd.xlane.f32.xlu1 %v1625_v22 }
 0x769   :  { %1623 = vadd.xlane.f32.xlu0 %v1622_v61 }
 0x7e1   :  { %v1585_v33 = vpop.xlane.xlu1 %1584 }
 0x7e2   :  { %v1599_v62 = vmul.f32 0.03125, %v1585_v33  ;;  %v1582_v31 = vpop.xlane.xlu0 %1581 }
 0x7e3   :  { %v1598_v63 = vmul.f32 0.03125, %v1582_v31 }
 0x7e4   :  { %v1635_v1 = vmul.f32 %v1599_v62, %v1599_v62  ;;  %v1670_v50 = vsub.f32 %v5046_v58, %v1599_v62 }
 0x7e5   :  { %v1615_v28 = vpop.xlane.xlu1 %1614  ;;  %v1634_v4 = vmul.f32 %v1598_v63, %v1598_v63  ;;  %v1669_v53 = vsub.f32 %v5049_v29, %v1598_v63 }
 0x7e6   :  { %v1629_v3 = vmul.f32 0.03125, %v1615_v28  ;;  %v1612_v32 = vpop.xlane.xlu0 %1611 }
 0x7e7   :  { %v1628_v5 = vmul.f32 0.03125, %v1612_v32 }
 0x7e8   :  { %v1641_v6 = vsub.f32 %v1629_v3, %v1635_v1 }
 0x7e9   :  { %v1640_v8 = vsub.f32 %v1628_v5, %v1634_v4  ;;  %v1591_v9 = vpop.xlane.xlu1 %1590 }
 0x7ea   :  { %v1647_v12 = vadd.f32 1e-05, %v1641_v6  ;;  %v1601_v13 = vmul.f32 0.03125, %v1591_v9  ;;  %v1588_v19 = vpop.xlane.xlu0 %1587 }
 0x7eb   :  { %v1646_v14 = vadd.f32 1e-05, %v1640_v8  ;;  %v1600_v15 = vmul.f32 0.03125, %v1588_v19 }
 0x7ec   :  { %4312 = vrsqrt.f32 %v1647_v12  ;;  %v1637_v49 = vmul.f32 %v1601_v13, %v1601_v13  ;;  %v1672_v29 = vsub.f32 %v5060_v44, %v1601_v13 }
 0x7ed   :  { %4314 = vrsqrt.f32 %v1646_v14  ;;  %v1621_v16 = vpop.xlane.xlu1 %1620  ;;  %v1636_v21 = vmul.f32 %v1600_v15, %v1600_v15  ;;  %v1671_v28 = vsub.f32 %v5064_v46, %v1600_v15 }
 0x7ee   :  { %v1631_v18 = vmul.f32 0.03125, %v1621_v16  ;;  %v1618_v20 = vpop.xlane.xlu0 %1617  ;;  %v3353_v16 = vld [vmem:[%s5371_s5 + $0xe0] sm:$0xff] }
 0x7ef   :  { %v1630_v56 = vmul.f32 0.03125, %v1618_v20  ;;  %v3355_v20 = vld [vmem:[%s5371_s5 + $0xf0] sm:$0xff] }
 0x7f0   :  { %v1643_v25 = vsub.f32 %v1631_v18, %v1637_v49  ;;  %v3354_v49 = vld [vmem:[%s5371_s5 + $0xe8] sm:$0xff] }
 0x7f1   :  { %v1642_v27 = vsub.f32 %v1630_v56, %v1636_v21  ;;  %v1597_v30 = vpop.xlane.xlu1 %1596  ;;  %v3356_v21 = vld [vmem:[%s5371_s5 + $0xf8] sm:$0xff] }
 0x7f2   :  { %v1649_v34 = vadd.f32 1e-05, %v1643_v25  ;;  %v1603_v7 = vmul.f32 0.03125, %v1597_v30  ;;  %v1594_v40 = vpop.xlane.xlu0 %1593  ;;  %v4153_v56 = vpack.c.bf16 %v3356_v21, %v3355_v20  ;;  %v3349_v25 = vld [vmem:[%s5371_s5 + $0xc0] sm:$0xff] }
 0x7f3   :  { %v1648_v41 = vadd.f32 1e-05, %v1642_v27  ;;  %v1602_v42 = vmul.f32 0.03125, %v1594_v40  ;;  %v3376_v40 = vld [vmem:[%s5371_s5 + $0x108] sm:$0xff] }
 0x7f4   :  { %4316 = vrsqrt.f32 %v1649_v34  ;;  %v1639_v45 = vmul.f32 %v1603_v7, %v1603_v7  ;;  %v1674_v12 = vsub.f32 %v5076_v26, %v1603_v7  ;;  %v3375_v7 = vld [vmem:[%s5371_s5 + $0x100] sm:$0xff] }
 0x7f5   :  { %4318 = vrsqrt.f32 %v1648_v41  ;;  %v1627_v43 = vpop.xlane.xlu1 %1626  ;;  %v1638_v52 = vmul.f32 %v1602_v42, %v1602_v42  ;;  %v1673_v13 = vsub.f32 %v5080_v55, %v1602_v42  ;;  %v4149_v55 = vpack.c.bf16 %v3354_v49, %v3353_v16 }
 0x7f6   :  { %v4313_v0 = vpop.eup %4312  ;;  %v1633_v17 = vmul.f32 0.03125, %v1627_v43  ;;  %v1624_v47 = vpop.xlane.xlu0 %1623 }
 0x7f7   :  { %v4315_v48 = vpop.eup %4314  ;;  %v1664_v51 = vmul.f32 %v4313_v0, %v3341_v2  ;;  %v1632_v11 = vmul.f32 0.03125, %v1624_v47  ;;  %v4360_v47 = vld [vmem:[#allocation2 + $0x8] sm:$0xff] }
 0x7f8   :  { %v1663_v10 = vmul.f32 %v4315_v48, %v3341_v2  ;;  %v1645_v54 = vsub.f32 %v1633_v17, %v1639_v45  ;;  %v4361_v48 = vld [vmem:[#allocation2 + $0x10] sm:$0xff] }
 0x7f9   :  { %v1644_v57 = vsub.f32 %v1632_v11, %v1638_v52  ;;  %v1676_v59 = vmul.f32 %v1670_v50, %v1664_v51  ;;  %v4362_v50 = vld [vmem:[#allocation2 + $0x18] sm:$0xff]  ;;  %v4363_v51 = vld [vmem:[#allocation2 + $0x20] sm:$0xff]  ;;  %v4364_v52 = vld [vmem:[#allocation2 + $0x28] sm:$0xff] }
 0x7fa   :  { %v1651_v23 = vadd.f32 1e-05, %v1645_v54  ;;  %v1675_v60 = vmul.f32 %v1669_v53, %v1663_v10  ;;  %v3377_v11 = vld [vmem:[%s5371_s5 + $0x110] sm:$0xff]  ;;  %v3378_v53 = vld [vmem:[%s5371_s5 + $0x118] sm:$0xff] }
 0x7fb   :  { %v1650_v22 = vadd.f32 1e-05, %v1644_v57  ;;  %v5095_v61 = vadd.f32 %v3342_v24, %v1676_v59  ;;  %v4181_v10 = vpack.c.bf16 %v3378_v53, %v3377_v11  ;;  %v2389_v11 = vld [vmem:[%s5373_s7] sm:$0xff]  ;;  %v2390_v53 = vld [vmem:[%s5373_s7 + $0x8] sm:$0xff] }
 0x7fc   :  { %4320 = vrsqrt.f32 %v1651_v23  ;;  %v5097_v33 = vadd.f32 %v3342_v24, %v1675_v60 }
 0x7fd   :  { %4322 = vrsqrt.f32 %v1650_v22 }
 0x7fe   :  { %v4317_v58 = vpop.eup %4316  ;;  %v4137_v62 = vpack.c.bf16 %v5095_v61, %v5097_v33 }
 0x7ff   :  { %v4319_v31 = vpop.eup %4318  ;;  %v1666_v63 = vmul.f32 %v4317_v58, %v3341_v2 }
 0x800   :  { %v1665_v1 = vmul.f32 %v4319_v31, %v3341_v2  ;;  %4138 = vmatprep.subr.bf16.mxu0 %v4137_v62 }
 0x801   :  { %4140 = vmatpush3.bf16.msra.mxu0 %v4137_v62  ;;  %v1678_v3 = vmul.f32 %v1672_v29, %v1666_v63 }
 0x802   :  { %v1677_v32 = vmul.f32 %v1671_v28, %v1665_v1 }
 0x803   :  { %v5103_v4 = vadd.f32 %v3342_v24, %v1678_v3 }
 0x804   :  { %v5105_v5 = vadd.f32 %v3342_v24, %v1677_v32 }
 0x806   :  { %v4321_v6 = vpop.eup %4320  ;;  %v4141_v8 = vpack.c.bf16 %v5103_v4, %v5105_v5 }
 0x807   :  { %v4323_v9 = vpop.eup %4322  ;;  %v1668_v44 = vmul.f32 %v4321_v6, %v3341_v2 }
 0x808   :  { %v1667_v46 = vmul.f32 %v4323_v9, %v3341_v2  ;;  %4142 = vmatprep.subr.bf16.mxu0 %v4141_v8  ;;  %v4177_v2 = vpack.c.bf16 %v3376_v40, %v3375_v7  ;;  %v3385_v9 = vld [vmem:[#allocation6 + $0x2] ss:$0 sm:$0xff] }
 0x809   :  { %4144 = vmatpush3.bf16.msra.mxu0 %v4141_v8  ;;  %v1680_v19 = vmul.f32 %v1674_v12, %v1668_v44 }
 0x80a   :  { %v1679_v14 = vmul.f32 %v1673_v13, %v1667_v46 }
 0x80b   :  { %v5111_v15 = vadd.f32 %v3342_v24, %v1680_v19 }
 0x80c   :  { %v5119_v18 = vadd.f32 %v3342_v24, %v1679_v14 }
 0x80e   :  { %v4145_v26 = vpack.c.bf16 %v5111_v15, %v5119_v18 }
 0x810   :  { %4146 = vmatprep.subr.bf16.mxu0 %v4145_v26 }
 0x811   :  { %4148 = vmatpush3.bf16.msra.mxu0 %v4145_v26 }
 0x812   :  { %4150 = vmatprep.subr.bf16.mxu0 %v4149_v55 }
 0x814   :  { %3844 = vmatmul.mubr.msk.f32.vlgmr.msra.gmra.mrb[18].mxu0 %vm278_vm2, %v4793_v35  ;;  %v3350_v35 = vld [vmem:[%s5371_s5 + $0xc8] sm:$0xff] }
 0x815   :  { %3846 = vmatprep.mubr.msk.f32.mxu0 %vm278_vm2, %v4795_v36  ;;  %4152 = vmatpush3.bf16.msra.mxu0 %v4149_v55  ;;  %v4157_v36 = vpack.c.bf16 %v3350_v35, %v3349_v25 }
 0x816   :  { %4154 = vmatprep.subr.bf16.mxu0 %v4153_v56 }
 0x818   :  { %3847 = vmatmul.mubr.msk.f32.gmra.mrb[20].mxu0 %vm278_vm2, %v4801_v37  ;;  %v3351_v37 = vld [vmem:[%s5371_s5 + $0xd0] sm:$0xff] }
 0x819   :  { %3849 = vmatprep.mubr.msk.f32.mxu0 %vm278_vm2, %v4803_v38  ;;  %4156 = vmatpush3.bf16.msra.mxu0 %v4153_v56  ;;  %v3352_v38 = vld [vmem:[%s5371_s5 + $0xd8] sm:$0xff] }
 0x81a   :  { %4158 = vmatprep.subr.bf16.mxu0 %v4157_v36  ;;  %v4161_v30 = vpack.c.bf16 %v3352_v38, %v3351_v37 }
 0x81c   :  { %3850 = vmatmul.mubr.msk.f32.gmra.mrb[22].mxu0 %vm278_vm2, %v4809_v39 }
 0x8e7   :  { %v3845_v27 = vpop.f32.mrb[18].mxu0 }
 0x8e8   :  { %v1758_v39 = vpop.f32.mrb[19].mxu0 }
 0x8e9   :  { %v4165_v34 = vpack.c.bf16 %v3845_v27, %v1758_v39  ;;  %3860 = vmatprep.mubr.msk.f32.mxu0 %vm401_vm3, %v1758_v39 }
 0x8ea   :  { %3861 = vmatmul.mubr.msk.f32.vlgmr.msra.gmra.mrb[24].mxu0 %vm401_vm3, %v3845_v27 }
 0x8eb   :  { %v3848_v41 = vpop.f32.mrb[20].mxu0  ;;  %4166 = vmatprep.subr.bf16.mxu1 %v4165_v34  ;;  %4160 = vmatpush3.bf16.msra.mxu0 %v4157_v36 }
 0x8ec   :  { %v1768_v42 = vpop.f32.mrb[21].mxu0  ;;  %4168 = vmatpush3.bf16.msra.mxu1 %v4165_v34  ;;  %4162 = vmatprep.subr.bf16.mxu0 %v4161_v30 }
 0x8ed   :  { %v4169_v43 = vpack.c.bf16 %v3848_v41, %v1768_v42  ;;  %3863 = vmatprep.mubr.msk.f32.mxu0 %vm401_vm3, %v1768_v42 }
 0x8ee   :  { %3864 = vmatmul.mubr.msk.f32.gmra.mrb[26].mxu0 %vm401_vm3, %v3848_v41 }
 0x8ef   :  { %v3851_v0 = vpop.f32.mrb[22].mxu0  ;;  %4170 = vmatprep.subr.bf16.mxu1 %v4169_v43  ;;  %4164 = vmatpush3.bf16.msra.mxu0 %v4161_v30 }
 0x8f0   :  { %v1778_v45 = vpop.f32.mrb[23].mxu0  ;;  %4172 = vmatpush3.bf16.msra.mxu1 %v4169_v43  ;;  %4178 = vmatprep.subr.bf16.mxu0 %v4177_v2 }
 0x8f1   :  { %v4173_v17 = vpack.c.bf16 %v3851_v0, %v1778_v45  ;;  %3866 = vmatprep.mubr.msk.f32.mxu0 %vm401_vm3, %v1778_v45 }
 0x8f2   :  { %3867 = vmatmul.mubr.msk.f32.gmra.mrb[28].mxu0 %vm401_vm3, %v3851_v0 }
 0x8f3   :  { %3877 = vmatprep.mubr.msk.f32.mxu0 %vm401_vm3, %v5097_v33  ;;  %4174 = vmatprep.subr.bf16.mxu1 %v4173_v17 }
 0x8f4   :  { %4176 = vmatpush3.bf16.msra.mxu1 %v4173_v17 }
 0x8f6   :  { %3878 = vmatmul.mubr.msk.f32.vlgmr.msra.gmra.mrb[24].mxu0 %vm401_vm3, %v5095_v61 }
 0x8f7   :  { %3880 = vmatprep.mubr.msk.f32.mxu0 %vm401_vm3, %v5105_v5  ;;  %3899 = vmatmul.mubr.msk.f32.vlgmr.msra.gmra.mrb[24].mxu1 %vm278_vm2, %v4360_v47 }
 0x8f8   :  { %3901 = vmatprep.mubr.msk.f32.mxu1 %vm278_vm2, %v4361_v48  ;;  %4180 = vmatpush3.bf16.msra.mxu0 %v4177_v2 }
 0x8f9   :  { %4182 = vmatprep.subr.bf16.mxu0 %v4181_v10 }
 0x8fa   :  { %3881 = vmatmul.mubr.msk.f32.gmra.mrb[26].mxu0 %vm401_vm3, %v5103_v4 }
 0x8fb   :  { %3883 = vmatprep.mubr.msk.f32.mxu0 %vm401_vm3, %v5119_v18  ;;  %3902 = vmatmul.mubr.msk.f32.gmra.mrb[26].mxu1 %vm278_vm2, %v4362_v50 }
 0x8fc   :  { %3904 = vmatprep.mubr.msk.f32.mxu1 %vm278_vm2, %v4363_v51  ;;  %4184 = vmatpush3.bf16.msra.mxu0 %v4181_v10  ;;  %v4185_v10 = vpack.c.bf16 %v2390_v53, %v2389_v11 }
 0x8fe   :  { %3884 = vmatmul.mubr.msk.f32.gmra.mrb[28].mxu0 %vm401_vm3, %v5111_v15  ;;  %4186 = vmatprep.subr.bf16.mxu1 %v4185_v10 }
 0x8ff   :  { %3905 = vmatmul.mubr.msk.f32.gmra.mrb[28].mxu1 %vm278_vm2, %v4364_v52 }
 0x900   :  { %4188 = vmatpush3.bf16.msra.mxu1 %v4185_v10 }
 0x9ca   :  { %v3900_v54 = vpop.f32.mrb[24].mxu1 }
 0x9cb   :  { %v2119_v24 = vmul.f32 2.0, %v3900_v54  ;;  %v2089_v57 = vpop.f32.mrb[25].mxu1  ;;  %v2391_v54 = vld [vmem:[%s5373_s7 + $0x10] sm:$0xff] }
 0x9cc   :  { %v2118_v59 = vmul.f32 2.0, %v2089_v57 }
 0x9cd   :  { %v2125_v22 = vsub.f32 %v2119_v24, %v5095_v61  ;;  %v2392_v24 = vld [vmem:[%s5373_s7 + $0x18] sm:$0xff] }
 0x9ce   :  { %v2124_v23 = vsub.f32 %v2118_v59, %v5097_v33  ;;  %v3903_v60 = vpop.f32.mrb[26].mxu1  ;;  %v4189_v57 = vpack.c.bf16 %v2392_v24, %v2391_v54 }
 0x9cf   :  { %v2121_v58 = vmul.f32 2.0, %v3903_v60  ;;  %v2099_v62 = vpop.f32.mrb[27].mxu1 }
 0x9d0   :  { %v2120_v31 = vmul.f32 2.0, %v2099_v62  ;;  %3915 = vmatprep.mubr.msk.f32.mxu0 %vm401_vm3, %v2124_v23  ;;  %4190 = vmatprep.subr.bf16.mxu1 %v4189_v57 }
 0x9d1   :  { %3916 = vmatmul.mubr.msk.f32.vlgmr.msra.gmra.mrb[24].mxu0 %vm401_vm3, %v2125_v22  ;;  %v2127_v28 = vsub.f32 %v2121_v58, %v5103_v4  ;;  %4192 = vmatpush3.bf16.msra.mxu1 %v4189_v57 }
 0x9d2   :  { %v2126_v29 = vsub.f32 %v2120_v31, %v5105_v5  ;;  %v3906_v63 = vpop.f32.mrb[28].mxu1 }
 0x9d3   :  { %v2123_v1 = vmul.f32 2.0, %v3906_v63  ;;  %v2109_v3 = vpop.f32.mrb[29].mxu1 }
 0x9d4   :  { %v2122_v32 = vmul.f32 2.0, %v2109_v3  ;;  %3918 = vmatprep.mubr.msk.f32.mxu0 %vm401_vm3, %v2126_v29 }
 0x9d5   :  { %3919 = vmatmul.mubr.msk.f32.gmra.mrb[26].mxu0 %vm401_vm3, %v2127_v28  ;;  %v2129_v8 = vsub.f32 %v2123_v1, %v5111_v15 }
 0x9d6   :  { %v2128_v6 = vsub.f32 %v2122_v32, %v5119_v18 }
 0x9d8   :  { %3921 = vmatprep.mubr.msk.f32.mxu0 %vm401_vm3, %v2128_v6 }
 0x9d9   :  { %3922 = vmatmul.mubr.msk.f32.gmra.mrb[28].mxu0 %vm401_vm3, %v2129_v8 }
 0xaa4   :  { %v3917_v12 = vpop.f32.mrb[24].mxu0 }
 0xaa5   :  { %v2260_v44 = vadd.f32 %v3917_v12, %v3385_v9  ;;  %v2219_v13 = vpop.f32.mrb[25].mxu0 }
 0xaa6   :  { %v2259_v46 = vadd.f32 %v3385_v9, %v2219_v13 }
 0xaa7   :  { %v2266_v19 = vmax.f32 %v2260_v44, 0.0 }
 0xaa8   :  { %v2265_v14 = vmax.f32 %v2259_v46, 0.0  ;;  %v3920_v16 = vpop.f32.mrb[26].mxu0 }
 0xaa9   :  { %v5199_v49 = vadd.f32 %v2266_v19, %v5095_v61  ;;  %v2262_v26 = vadd.f32 %v3920_v16, %v3385_v9  ;;  %v2229_v55 = vpop.f32.mrb[27].mxu0 }
 0xaaa   :  { %v5202_v20 = vadd.f32 %v2265_v14, %v5097_v33  ;;  %v2261_v21 = vadd.f32 %v3385_v9, %v2229_v55 }
 0xaab   :  { %v2268_v56 = vmax.f32 %v2262_v26, 0.0  ;;  %v2280_v25 = vsel %vm401_vm3, %v5199_v49, 0.0  ;;  %v2302_v35 = vmul.f32 %v5199_v49, %v5199_v49 }
 0xaac   :  { %v2267_v36 = vmax.f32 %v2261_v21, 0.0  ;;  %2281 = vadd.xlane.f32.xlu1 %v2280_v25  ;;  %v3923_v37 = vpop.f32.mrb[28].mxu0  ;;  %v2277_v61 = vsel %vm401_vm3, %v5202_v20, 0.0  ;;  %v2301_v38 = vmul.f32 %v5202_v20, %v5202_v20 }
 0xaad   :  { %2278 = vadd.xlane.f32.xlu0 %v2277_v61  ;;  %v2239_v33 = vpop.f32.mrb[29].mxu0  ;;  %v5213_v27 = vadd.f32 %v2268_v56, %v5103_v4  ;;  %v2264_v39 = vadd.f32 %v3923_v37, %v3385_v9  ;;  %v2310_v30 = vsel %vm401_vm3, %v2302_v35, 0.0 }
 0xaae   :  { %v5217_v34 = vadd.f32 %v2267_v36, %v5105_v5  ;;  %v2263_v7 = vadd.f32 %v3385_v9, %v2239_v33  ;;  %v2307_v40 = vsel %vm401_vm3, %v2301_v38, 0.0  ;;  %v3386_v38 = vld [vmem:[#allocation6 + $0x5] ss:$0 sm:$0xff] }
 0xaaf   :  { %v2270_v41 = vmax.f32 %v2264_v39, 0.0  ;;  %v2286_v42 = vsel %vm401_vm3, %v5213_v27, 0.0  ;;  %v2304_v2 = vmul.f32 %v5213_v27, %v5213_v27 }
 0xab0   :  { %2311 = vadd.xlane.f32.xlu1 %v2310_v30  ;;  %v2269_v4 = vmax.f32 %v2263_v7, 0.0  ;;  %v2283_v43 = vsel %vm401_vm3, %v5217_v34, 0.0  ;;  %v2303_v5 = vmul.f32 %v5217_v34, %v5217_v34 }
 0xab1   :  { %2308 = vadd.xlane.f32.xlu0 %v2307_v40  ;;  %v5229_v0 = vadd.f32 %v2270_v41, %v5111_v15  ;;  %v2316_v45 = vsel %vm401_vm3, %v2304_v2, 0.0 }
 0xab2   :  { %v5233_v17 = vadd.f32 %v2269_v4, %v5119_v18  ;;  %v2313_v47 = vsel %vm401_vm3, %v2303_v5, 0.0 }
 0xab3   :  { %v2292_v48 = vsel %vm401_vm3, %v5229_v0, 0.0  ;;  %v2306_v50 = vmul.f32 %v5229_v0, %v5229_v0 }
 0xab4   :  { %2287 = vadd.xlane.f32.xlu1 %v2286_v42  ;;  %v2289_v15 = vsel %vm401_vm3, %v5233_v17, 0.0  ;;  %v2305_v51 = vmul.f32 %v5233_v17, %v5233_v17 }
 0xab5   :  { %2284 = vadd.xlane.f32.xlu0 %v2283_v43  ;;  %v2322_v18 = vsel %vm401_vm3, %v2306_v50, 0.0 }
 0xab6   :  { %v2319_v52 = vsel %vm401_vm3, %v2305_v51, 0.0 }
 0xab8   :  { %2317 = vadd.xlane.f32.xlu1 %v2316_v45 }
 0xab9   :  { %2314 = vadd.xlane.f32.xlu0 %v2313_v47 }
 0xabc   :  { %2293 = vadd.xlane.f32.xlu1 %v2292_v48 }
 0xabd   :  { %2290 = vadd.xlane.f32.xlu0 %v2289_v15  ;;  %v3387_v15 = vld [vmem:[#allocation6 + $0x8] ss:$0 sm:$0xff] }
 0xac0   :  { %2323 = vadd.xlane.f32.xlu1 %v2322_v18 }
 0xac1   :  { %2320 = vadd.xlane.f32.xlu0 %v2319_v52 }
 0xb39   :  { %v2282_v59 = vpop.xlane.xlu1 %2281 }
 0xb3a   :  { %v2296_v23 = vmul.f32 0.03125, %v2282_v59  ;;  %v2279_v60 = vpop.xlane.xlu0 %2278 }
 0xb3b   :  { %v2295_v22 = vmul.f32 0.03125, %v2279_v60 }
 0xb3c   :  { %v2332_v62 = vmul.f32 %v2296_v23, %v2296_v23  ;;  %v2367_v42 = vsub.f32 %v5199_v49, %v2296_v23 }
 0xb3d   :  { %v2312_v58 = vpop.xlane.xlu1 %2311  ;;  %v2331_v63 = vmul.f32 %v2295_v22, %v2295_v22  ;;  %v2366_v5 = vsub.f32 %v5202_v20, %v2295_v22 }
 0xb3e   :  { %v2326_v31 = vmul.f32 0.03125, %v2312_v58  ;;  %v2309_v29 = vpop.xlane.xlu0 %2308 }
 0xb3f   :  { %v2325_v28 = vmul.f32 0.03125, %v2309_v29 }
 0xb40   :  { %v2338_v1 = vsub.f32 %v2326_v31, %v2332_v62 }
 0xb41   :  { %v2337_v3 = vsub.f32 %v2325_v28, %v2331_v63  ;;  %v2288_v32 = vpop.xlane.xlu1 %2287 }
 0xb42   :  { %v2344_v6 = vadd.f32 1e-05, %v2338_v1  ;;  %v2298_v8 = vmul.f32 0.03125, %v2288_v32  ;;  %v2285_v9 = vpop.xlane.xlu0 %2284  ;;  %v4536_v32 = vmov 0.0|0.0  }
 0xb43   :  { %v2343_v12 = vadd.f32 1e-05, %v2337_v3  ;;  %v2297_v44 = vmul.f32 0.03125, %v2285_v9  ;;  %4193 = vmatprep.subr.bf16.mxu1 %v4536_v32  ;;  %4202 = vmatprep.subr.bf16.mxu0 %v4536_v32 }
 0xb44   :  { %4324 = vrsqrt.f32 %v2344_v6  ;;  %v2334_v46 = vmul.f32 %v2298_v8, %v2298_v8  ;;  %v2369_v54 = vsub.f32 %v5213_v27, %v2298_v8  ;;  %v2586_v6 = vld [vmem:[#allocation7 + $0x8] sm:$0xff]  ;;  %v2587_v8 = vld [vmem:[#allocation7 + $0x10] sm:$0xff] }
 0xb45   :  { %4326 = vrsqrt.f32 %v2343_v12  ;;  %v2318_v13 = vpop.xlane.xlu1 %2317  ;;  %v2333_v16 = vmul.f32 %v2297_v44, %v2297_v44  ;;  %v2368_v24 = vsub.f32 %v5217_v34, %v2297_v44  ;;  %v2588_v12 = vld [vmem:[#allocation7 + $0x18] sm:$0xff] }
 0xb46   :  { %v2328_v19 = vmul.f32 0.03125, %v2318_v13  ;;  %v2315_v14 = vpop.xlane.xlu0 %2314  ;;  %v4206_v44 = vpack.c.bf16 %v2588_v12, %v2587_v8  ;;  %v3388_v13 = vld [vmem:[#allocation6 + $0x9] ss:$0 sm:$0xff] }
 0xb47   :  { %v2327_v26 = vmul.f32 0.03125, %v2315_v14 }
 0xb48   :  { %v2340_v55 = vsub.f32 %v2328_v19, %v2334_v46 }
 0xb49   :  { %v2339_v21 = vsub.f32 %v2327_v26, %v2333_v16  ;;  %v2294_v56 = vpop.xlane.xlu1 %2293 }
 0xb4a   :  { %v2346_v25 = vadd.f32 1e-05, %v2340_v55  ;;  %v2300_v35 = vmul.f32 0.03125, %v2294_v56  ;;  %v2291_v36 = vpop.xlane.xlu0 %2290 }
 0xb4b   :  { %v2345_v37 = vadd.f32 1e-05, %v2339_v21  ;;  %v2299_v61 = vmul.f32 0.03125, %v2291_v36 }
 0xb4c   :  { %4328 = vrsqrt.f32 %v2346_v25  ;;  %v2336_v30 = vmul.f32 %v2300_v35, %v2300_v35  ;;  %v2371_v31 = vsub.f32 %v5229_v0, %v2300_v35  ;;  %v4538_v0 = vmov 0.0  }
 0xb4d   :  { %4330 = vrsqrt.f32 %v2345_v37  ;;  %v2324_v33 = vpop.xlane.xlu1 %2323  ;;  %v2335_v4 = vmul.f32 %v2299_v61, %v2299_v61  ;;  %v2370_v27 = vsub.f32 %v5233_v17, %v2299_v61  ;;  %3964 = vmatprep.mubr.msk.f32.mxu0 %vm4537_vm4, %v4538_v0  ;;  %v2585_v17 = vld [vmem:[#allocation7] sm:$0xff] }
 0xb4e   :  { %v4325_v39 = vpop.eup %4324  ;;  %v2330_v7 = vmul.f32 0.03125, %v2324_v33  ;;  %v2321_v40 = vpop.xlane.xlu0 %2320  ;;  %v4203_v9 = vpack.c.bf16 %v2586_v6, %v2585_v17  ;;  %v2669_v33 = vld [vmem:[#allocation9] sm:$0xff] }
 0xb4f   :  { %v4327_v41 = vpop.eup %4326  ;;  %v2361_v2 = vmul.f32 %v4325_v39, %v3386_v38  ;;  %v2329_v43 = vmul.f32 0.03125, %v2321_v40  ;;  %v2670_v39 = vld [vmem:[#allocation9 + $0x8] sm:$0xff] }
 0xb50   :  { %v2342_v45 = vsub.f32 %v2330_v7, %v2336_v30  ;;  %v2360_v47 = vmul.f32 %v4327_v41, %v3386_v38  ;;  %4204 = vmatpush3.bf16.msra.mxu0 %v4203_v9  ;;  %v2511_v7 = vld [vmem:[#allocation4] sm:$0x3f]  ;;  %v4209_v40 = vpack.c.bf16 %v2670_v39, %v2669_v33  ;;  %v2671_v41 = vld [vmem:[#allocation9 + $0x10] sm:$0xff] }
 0xb51   :  { %v2373_v48 = vmul.f32 %v2367_v42, %v2361_v2  ;;  %v2341_v50 = vsub.f32 %v2329_v43, %v2335_v4  ;;  %4205 = vmatprep.subr.bf16.mxu0 %v4536_v32  ;;  %v2672_v42 = vld [vmem:[#allocation9 + $0x18] sm:$0xff] }
 0xb52   :  { %v2348_v51 = vadd.f32 1e-05, %v2342_v45  ;;  %v2372_v18 = vmul.f32 %v2366_v5, %v2360_v47  ;;  %v4212_v2 = vpack.c.bf16 %v2672_v42, %v2671_v41  ;;  %v3396_v47 = vld [vmem:[%s5376_s10] ss:$0 sm:$0xff]  ;;  %v2988_v41 = vld [vmem:[#allocation10 + $0x8] sm:$0xff]  ;;  %v2989_v42 = vld [vmem:[#allocation10 + $0x10] sm:$0xff] }
 0xb53   :  { %v2347_v52 = vadd.f32 1e-05, %v2341_v50  ;;  %v2384_v53 = vadd.f32 %v3387_v15, %v2373_v48 }
 0xb54   :  { %4332 = vrsqrt.f32 %v2348_v51  ;;  %v2383_v11 = vadd.f32 %v3387_v15, %v2372_v18  ;;  %4207 = vmatpush3.bf16.msra.mxu0 %v4206_v44 }
 0xb55   :  { %4334 = vrsqrt.f32 %v2347_v52  ;;  %4214 = vmatprep.subr.bf16.mxu0 %v4536_v32 }
 0xb56   :  { %v4329_v10 = vpop.eup %4328  ;;  %3932 = vmatprep.mubr.msk.f32.mxu1 %vm401_vm3, %v2383_v11 }
 0xb57   :  { %v4331_v49 = vpop.eup %4330  ;;  %3933 = vmatmul.mubr.msk.f32.vlgmr.msra.gmra.mrb[30].mxu1 %vm401_vm3, %v2384_v53  ;;  %v2363_v20 = vmul.f32 %v4329_v10, %v3386_v38 }
 0xb58   :  { %v2362_v57 = vmul.f32 %v4331_v49, %v3386_v38 }
 0xb59   :  { %v2375_v59 = vmul.f32 %v2369_v54, %v2363_v20 }
 0xb5a   :  { %v2374_v23 = vmul.f32 %v2368_v24, %v2362_v57 }
 0xb5b   :  { %v2386_v22 = vadd.f32 %v3387_v15, %v2375_v59 }
 0xb5c   :  { %v2385_v60 = vadd.f32 %v3387_v15, %v2374_v23 }
 0xb5e   :  { %v4333_v58 = vpop.eup %4332  ;;  %3935 = vmatprep.mubr.msk.f32.mxu1 %vm401_vm3, %v2385_v60 }
 0xb5f   :  { %v4335_v62 = vpop.eup %4334  ;;  %3936 = vmatmul.mubr.msk.f32.gmra.mrb[32].mxu1 %vm401_vm3, %v2386_v22  ;;  %v2365_v29 = vmul.f32 %v4333_v58, %v3386_v38 }
 0xb60   :  { %v2364_v63 = vmul.f32 %v4335_v62, %v3386_v38 }
 0xb61   :  { %v2377_v28 = vmul.f32 %v2371_v31, %v2365_v29 }
 0xb62   :  { %v2376_v1 = vmul.f32 %v2370_v27, %v2364_v63 }
 0xb63   :  { %v2388_v3 = vadd.f32 %v3387_v15, %v2377_v28 }
 0xb64   :  { %v2387_v34 = vadd.f32 %v3387_v15, %v2376_v1 }
 0xb66   :  { %3938 = vmatprep.mubr.msk.f32.mxu1 %vm401_vm3, %v2387_v34 }
 0xb67   :  { %3939 = vmatmul.mubr.msk.f32.gmra.mrb[34].mxu1 %vm401_vm3, %v2388_v3 }
 0xb68   :  { %3953 = vmatprep.mubr.msk.f32.mxu1 %vm4537_vm4, %v4538_v0 }
 0xc2a   :  { %v3934_v46 = vpop.f32.mrb[30].mxu1 }
 0xc2b   :  { %v2488_v19 = vadd.f32 %v3934_v46, %v3388_v13  ;;  %v2482_v14 = vpop.f32.mrb[31].mxu1 }
 0xc2c   :  { %v2483_v16 = vadd.f32 %v3388_v13, %v2482_v14 }
 0xc2e   :  { %v4194_v26 = vpack.c.bf16 %v2488_v19, %v2483_v16 }
 0xc30   :  { %4195 = vmatpush3.bf16.msra.mxu1 %v4194_v26 }
 0xc31   :  { %4196 = vmatprep.subr.bf16.mxu1 %v4536_v32 }
 0xc32   :  { %v3937_v55 = vpop.f32.mrb[32].mxu1 }
 0xc33   :  { %v2498_v21 = vadd.f32 %v3937_v55, %v3388_v13  ;;  %v2492_v56 = vpop.f32.mrb[33].mxu1 }
 0xc34   :  { %v2493_v25 = vadd.f32 %v3388_v13, %v2492_v56 }
 0xc36   :  { %v4197_v35 = vpack.c.bf16 %v2498_v21, %v2493_v25 }
 0xc38   :  { %4198 = vmatpush3.bf16.msra.mxu1 %v4197_v35 }
 0xc39   :  { %4199 = vmatprep.subr.bf16.mxu1 %v4536_v32 }
 0xc3a   :  { %v3940_v36 = vpop.f32.mrb[34].mxu1 }
 0xc3b   :  { %v2508_v37 = vadd.f32 %v3940_v36, %v3388_v13  ;;  %v2502_v61 = vpop.f32.mrb[35].mxu1 }
 0xc3c   :  { %v2503_v38 = vadd.f32 %v3388_v13, %v2502_v61 }
 0xc3e   :  { %v4200_v30 = vpack.c.bf16 %v2508_v37, %v2503_v38 }
 0xc40   :  { %4201 = vmatpush3.bf16.msra.mxu1 %v4200_v30 }
 0xc41   :  { %4208 = vmatprep.subr.bf16.mxu1 %v4536_v32 }
 0xc43   :  { %3954 = vmatmul.mubr.msk.f32.vlgmr.msra.gmra.mrb[36].mxu1 %vm278_vm2, %v2511_v7 }
 0xc44   :  { %4210 = vmatpush3.bf16.msra.mxu1 %v4209_v40  ;;  %3975 = vmatprep.mubr.msk.f32.mxu1 %vm4537_vm4, %v4538_v0 }
 0xc45   :  { %4211 = vmatprep.subr.bf16.mxu1 %v4536_v32 }
 0xc48   :  { %4213 = vmatpush3.bf16.msra.mxu1 %v4212_v2 }
 0xc49   :  { %4220 = vmatprep.subr.bf16.mxu1 %v4536_v32 }
 0xc4b   :  { %3976 = vmatmul.mubr.f32.vlgmr.msra.gmra.mrb[38].mxu1 %v4538_v0 }
 0xc4c   :  { %4222 = vmatpush3.bf16.msra.mxu1 %v4209_v40  ;;  %3997 = vmatprep.mubr.msk.f32.mxu1 %vm4537_vm4, %v4538_v0 }
 0xc4d   :  { %4223 = vmatprep.subr.bf16.mxu1 %v4536_v32 }
 0xc50   :  { %4225 = vmatpush3.bf16.msra.mxu1 %v4212_v2 }
 0xc51   :  { %4232 = vmatprep.subr.bf16.mxu1 %v4536_v32 }
 0xd16   :  { %v2581_v4 = vpop.f32.mrb[36].mxu1 }
 0xd17   :  { %v3955_v43 = vpop.f32.mrb[37].mxu1  ;;  %3965 = vmatmul.mubr.msk.f32.vlgmr.msra.gmra.mrb[30].mxu0 %vm401_vm3, %v2581_v4  ;;  %v2990_v4 = vld [vmem:[#allocation10 + $0x18] sm:$0xff] }
 0xd18   :  { %4216 = vmatpush3.bf16.msra.mxu0 %v4209_v40  ;;  %3986 = vmatprep.mubr.msk.f32.mxu0 %vm4537_vm4, %v4538_v0  ;;  %v2987_v40 = vld [vmem:[#allocation10] sm:$0xff]  ;;  %v4230_v43 = vpack.c.bf16 %v2990_v4, %v2989_v42 }
 0xd19   :  { %4217 = vmatprep.subr.bf16.mxu0 %v4536_v32 }
 0xd1c   :  { %4219 = vmatpush3.bf16.msra.mxu0 %v4212_v2  ;;  %v4227_v2 = vpack.c.bf16 %v2988_v41, %v2987_v40 }
 0xd1d   :  { %4226 = vmatprep.subr.bf16.mxu0 %v4536_v32 }
 0xd1e   :  { %v2742_v5 = vpop.f32.mrb[38].mxu1 }
 0xd1f   :  { %v3977_v45 = vpop.f32.mrb[39].mxu1 }
 0xd20   :  { %v3072_v45 = vld [vmem:[%s5378_s12] sm:$0xff] }
 0xdea   :  { %v2665_v48 = vpop.f32.mrb[30].mxu0 }
 0xdeb   :  { %v2666_v50 = vadd.f32 %v3396_v47, %v2665_v48  ;;  %v3966_v15 = vpop.f32.mrb[31].mxu0  ;;  %v3073_v47 = vld [vmem:[%s5378_s12 + $0x8] sm:$0xff]  ;;  %v3074_v48 = vld [vmem:[%s5378_s12 + $0x10] sm:$0xff] }
 0xdec   :  { %v3075_v15 = vld [vmem:[%s5378_s12 + $0x18] sm:$0xff] }
 0xded   :  { %v2746_v51 = vadd.f32 %v2742_v5, %v2666_v50 }
 0xdef   :  { %4336 = vtanh.f32 %v2746_v51  ;;  %v3398_v52 = vmul.f32 -1.442695, %v2746_v51  ;;  %v4236_v51 = vpack.c.bf16 %v3075_v15, %v3074_v48 }
 0xdf1   :  { %4338 = vpow2.f32 %v3398_v52  ;;  %v3077_v52 = vld [vmem:[%s5378_s12 + $0x28] sm:$0xff] }
 0xdf9   :  { %v4337_v18 = vpop.eup %4336 }
 0xdfa   :  { %2756 = vrot.lane.b32.xlu0 %v4337_v18, %s4539_s28  ;;  %v3076_v18 = vld [vmem:[%s5378_s12 + $0x20] sm:$0xff] }
 0xdfb   :  { %v4339_v11 = vpop.eup %4338 }
 0xdfc   :  { %v2750_v53 = vadd.f32 1.0, %v4339_v11  ;;  %v4239_v11 = vpack.c.bf16 %v3077_v52, %v3076_v18 }
 0xdfe   :  { %4340 = vrcp.f32 %v2750_v53 }
 0xe08   :  { %v4341_v10 = vpop.eup %4340 }
 0xe09   :  { %v2754_v20 = vmul.f32 0.0, %v4341_v10 }
 0xe6c   :  { %v2757_v49 = vpop.permute.xlu0 %2756 }
 0xe6d   :  { %v2759_v54 = vmul.f32 %v4341_v10, %v2757_v49 }
 0xe6f   :  { %2761 = vrot.lane.b32.xlu1 %v2759_v54, %s4540_s30 }
 0xee1   :  { %v2762_v24 = vpop.permute.xlu1 %2761 }
 0xee2   :  { %v2764_v57 = vadd.f32 %v2762_v24, %v2754_v20  ;;  %v3078_v20 = vld [vmem:[%s5378_s12 + $0x30] sm:$0xff]  ;;  %v3079_v24 = vld [vmem:[%s5378_s12 + $0x38] sm:$0xff] }
 0xee4   :  { %4342 = vtanh.f32 %v2764_v57  ;;  %v2858_v6 = vrot.slane %v2764_v57, 6  ;;  %v4242_v57 = vpack.c.bf16 %v3079_v24, %v3078_v20 }
 0xeee   :  { %v4343_v59 = vpop.eup %4342 }
 0xeef   :  { %2767 = vrot.lane.b32.xlu1 %v4343_v59, %s4539_s28  ;;  %v3159_v59 = vld [vmem:[%s5379_s13] sm:$0xff] }
 0xf61   :  { %v2768_v23 = vpop.permute.xlu1 %2767 }
 0xf62   :  { %v2770_v60 = vmul.f32 %v4341_v10, %v2768_v23  ;;  %v3160_v23 = vld [vmem:[%s5379_s13 + $0x8] sm:$0xff] }
 0xf64   :  { %2772 = vrot.lane.b32.xlu1 %v2770_v60, %s4540_s30  ;;  %v4245_v60 = vpack.c.bf16 %v3160_v23, %v3159_v59 }
 0xfd6   :  { %v2773_v22 = vpop.permute.xlu1 %2772 }
 0xfd7   :  { %3987 = vmatmul.mubr.msk.f32.vlgmr.msra.gmra.mrb[32].mxu0 %vm401_vm3, %v2773_v22 }
 0xfd8   :  { %4008 = vmatprep.mubr.msk.f32.mxu0 %vm4537_vm4, %v4538_v0  ;;  %4228 = vmatpush3.bf16.msra.mxu0 %v4227_v2 }
 0xfd9   :  { %4229 = vmatprep.subr.bf16.mxu0 %v4536_v32 }
 0xfdc   :  { %4231 = vmatpush3.bf16.msra.mxu0 %v4230_v43 }
 0xfdd   :  { %4244 = vmatprep.subr.bf16.mxu0 %v4536_v32 }
0x10aa   :  { %v2842_v58 = vpop.f32.mrb[32].mxu0 }
0x10ab   :  { %v2847_v62 = vrot.slane %v2842_v58, 6  ;;  %v3988_v31 = vpop.f32.mrb[33].mxu0 }
0x10ad   :  { %v2849_v29 = vadd.f32 %v2847_v62, %v2666_v50 }
0x10af   :  { %4344 = vtanh.f32 %v2849_v29  ;;  %v3400_v63 = vmul.f32 -1.442695, %v2849_v29  ;;  %v3161_v29 = vld [vmem:[%s5379_s13 + $0x10] sm:$0xff] }
0x10b1   :  { %4346 = vpow2.f32 %v3400_v63 }
0x10b9   :  { %v4345_v27 = vpop.eup %4344 }
0x10ba   :  { %2862 = vrot.lane.b32.xlu0 %v4345_v27, %s4539_s28  ;;  %v3162_v27 = vld [vmem:[%s5379_s13 + $0x18] sm:$0xff] }
0x10bb   :  { %v4347_v28 = vpop.eup %4346  ;;  %v4248_v63 = vpack.c.bf16 %v3162_v27, %v3161_v29 }
0x10bc   :  { %v2853_v1 = vadd.f32 1.0, %v4347_v28  ;;  %v3405_v28 = vld [vmem:[#allocation12 + $0x1] ss:$0 sm:$0xff] }
0x10be   :  { %4348 = vrcp.f32 %v2853_v1 }
0x10c8   :  { %v4349_v34 = vpop.eup %4348 }
0x10c9   :  { %v2860_v8 = vmul.f32 %v4349_v34, %v2858_v6 }
0x112c   :  { %v2863_v3 = vpop.permute.xlu0 %2862 }
0x112d   :  { %v2865_v17 = vmul.f32 %v4349_v34, %v2863_v3 }
0x112f   :  { %2867 = vrot.lane.b32.xlu1 %v2865_v17, %s4540_s30  ;;  %v3407_v17 = vld [vmem:[#allocation12 + $0x2] ss:$0 sm:$0xff] }
0x11a1   :  { %v2868_v9 = vpop.permute.xlu1 %2867 }
0x11a2   :  { %v2870_v12 = vadd.f32 %v2868_v9, %v2860_v8 }
0x11a4   :  { %4350 = vtanh.f32 %v2870_v12  ;;  %v2965_v33 = vrot.slane %v2870_v12, 6 }
0x11ae   :  { %v4351_v44 = vpop.eup %4350 }
0x11af   :  { %2873 = vrot.lane.b32.xlu0 %v4351_v44, %s4539_s28 }
0x1221   :  { %v2874_v13 = vpop.permute.xlu0 %2873 }
0x1222   :  { %v2876_v46 = vmul.f32 %v4349_v34, %v2874_v13 }
0x1224   :  { %v2878_v19 = vrot.slane %v2876_v46, 2 }
0x1226   :  { %2879 = vrot.lane.b32.xlu1 %v2878_v19, %s4540_s30 }
0x1298   :  { %v2880_v14 = vpop.permute.xlu1 %2879 }
0x1299   :  { %3998 = vmatmul.mubr.msk.f32.vlgmr.msra.gmra.mrb[40].mxu1 %vm401_vm3, %v2880_v14 }
0x129a   :  { %4027 = vmatprep.mubr.msk.f32.mxu1 %vm4537_vm4, %v4538_v0 }
0x136c   :  { %v2949_v16 = vpop.f32.mrb[40].mxu1 }
0x136d   :  { %v2954_v26 = vrot.slane %v2949_v16, 4  ;;  %v3999_v55 = vpop.f32.mrb[41].mxu1 }
0x136f   :  { %v2956_v21 = vadd.f32 %v2954_v26, %v2666_v50  ;;  %v4233_v50 = vpack.c.bf16 %v3073_v47, %v3072_v45 }
0x1371   :  { %4352 = vtanh.f32 %v2956_v21  ;;  %v3402_v25 = vmul.f32 -1.442695, %v2956_v21  ;;  %4234 = vmatpush3.bf16.msra.mxu1 %v4233_v50 }
0x1372   :  { %4235 = vmatprep.subr.bf16.mxu1 %v4536_v32 }
0x1373   :  { %4354 = vpow2.f32 %v3402_v25 }
0x1375   :  { %4237 = vmatpush3.bf16.msra.mxu1 %v4236_v51 }
0x1376   :  { %4238 = vmatprep.subr.bf16.mxu1 %v4536_v32 }
0x1379   :  { %4240 = vmatpush3.bf16.msra.mxu1 %v4239_v11 }
0x137a   :  { %4241 = vmatprep.subr.bf16.mxu1 %v4536_v32 }
0x137b   :  { %v4353_v56 = vpop.eup %4352 }
0x137c   :  { %2969 = vrot.lane.b32.xlu0 %v4353_v56, %s4539_s28 }
0x137d   :  { %v4355_v35 = vpop.eup %4354  ;;  %4243 = vmatpush3.bf16.msra.mxu1 %v4242_v57 }
0x137e   :  { %v2960_v36 = vadd.f32 1.0, %v4355_v35 }
0x1380   :  { %4356 = vrcp.f32 %v2960_v36 }
0x138a   :  { %v4357_v37 = vpop.eup %4356 }
0x138b   :  { %v2967_v39 = vmul.f32 %v4357_v37, %v2965_v33 }
0x13ee   :  { %v2970_v61 = vpop.permute.xlu0 %2969 }
0x13ef   :  { %v2972_v38 = vmul.f32 %v4357_v37, %v2970_v61 }
0x13f1   :  { %2974 = vrot.lane.b32.xlu1 %v2972_v38, %s4540_s30 }
0x1463   :  { %v2975_v30 = vpop.permute.xlu1 %2974 }
0x1464   :  { %v2977_v7 = vadd.f32 %v2975_v30, %v2967_v39 }
0x1466   :  { %4358 = vtanh.f32 %v2977_v7 }
0x1470   :  { %v4359_v5 = vpop.eup %4358 }
0x1471   :  { %2980 = vrot.lane.b32.xlu0 %v4359_v5, %s4539_s28 }
0x14e3   :  { %v2981_v53 = vpop.permute.xlu0 %2980 }
0x14e4   :  { %v2983_v10 = vmul.f32 %v4357_v37, %v2981_v53 }
0x14e6   :  { %v2996_v49 = vrot.slane %v2983_v10, 4 }
0x14e8   :  { %2997 = vrot.lane.b32.xlu1 %v2996_v49, %s4540_s30 }
0x155a   :  { %v2998_v54 = vpop.permute.xlu1 %2997 }
0x155b   :  { %4009 = vmatmul.mubr.msk.f32.vlgmr.msra.gmra.mrb[34].mxu0 %vm401_vm3, %v2998_v54 }
0x155c   :  { %4038 = vmatprep.mubr.msk.f32.mxu0 %vm4537_vm4, %v4538_v0  ;;  %4246 = vmatpush3.bf16.msra.mxu0 %v4245_v60  ;;  %v3403_v0 = vld [vmem:[#allocation12] ss:$0 sm:$0xff] }
0x155d   :  { %4247 = vmatprep.subr.bf16.mxu0 %v4536_v32 }
0x1560   :  { %4249 = vmatpush3.bf16.msra.mxu0 %v4248_v63 }
0x162e   :  { %v3067_v22 = vpop.f32.mrb[34].mxu0 }
0x162f   :  { %v3068_v58 = vadd.f32 %v3403_v0, %v3067_v22  ;;  %v4010_v62 = vpop.f32.mrb[35].mxu0 }
0x1631   :  { %v3071_v31 = vmax.f32 %v3068_v58, 0.0 }
0x1633   :  { %4028 = vmatmul.mubr.msk.f32.vlgmr.msra.gmra.mrb[42].mxu1 %vm3084_vm5, %v3071_v31 }
0x1706   :  { %v3154_v1 = vpop.f32.mrb[42].mxu1 }
0x1707   :  { %v3155_v32 = vadd.f32 %v3405_v28, %v3154_v1  ;;  %v4029_v34 = vpop.f32.mrb[43].mxu1 }
0x1709   :  { %v3158_v3 = vmax.f32 %v3155_v32, 0.0 }
0x170b   :  { %4039 = vmatmul.mubr.msk.f32.vlgmr.msra.gmra.mrb[36].mxu0 %vm401_vm3, %v3158_v3 }
0x17de   :  { %v3236_v6 = vpop.f32.mrb[36].mxu0 }
0x17df   :  { %v3237_v8 = vadd.f32 %v3407_v17, %v3236_v6  ;;  %v4040_v9 = vpop.f32.mrb[37].mxu0 }
0x17e1   :  { %3241 = vst.msk [vmem:[%s5381_s15] sm:$0x3] %vm3240_vm6, %v3237_v8 }
0x17e2   :  { %3246 = vsyncpa [#allocation3], 1 }
0x17e3   :  { %3247 = vsyncpa [#allocation5], 1 }
0x17e4   :  { %3248 = vsyncpa [#allocation8], 1 }
0x17e5   :  { %3249 = vsyncpa [#allocation11], 1 }

</bundles_post_ra>
